<compile_context>
chip_gen: v5e
topology: v5e:2x2
jax: 0.10.0
libtpu: 0.0.40
codegen_flags: <defaults>
</compile_context>

<pallas_src>
import jax
import jax.numpy as jnp
from jax import lax
from jax.experimental import pallas as pl
from jax.experimental.pallas import tpu as pltpu


def _gru_chunk_kernel(gi_ref, whh_ref, bhn_ref, out_ref, h_ref):
    # gi_ref:  (T_CHUNK, B_TILE, 3*H_pad) f32   precomputed x@W_ih + b_i, gates [r|z|n]
    # whh_ref: (H_pad, 3*H_pad)           bf16  stacked hidden-side weights [r|z|n]
    # bhn_ref: (1, H_pad)                 f32   b_hn (stays inside r*(...))
    # out_ref: (T_CHUNK, B_TILE, H_pad)   f32   GRU outputs for this time chunk
    # h_ref:   (B_TILE, H_pad)            f32   persistent hidden state (VMEM scratch)
    t_chunk, bt, _ = gi_ref.shape
    hp = bhn_ref.shape[1]

    # First time-chunk for this batch tile: zero the carried hidden state.
    @pl.when(pl.program_id(1) == 0)
    def _():
        h_ref[...] = jnp.zeros_like(h_ref)

    w_hh = whh_ref[...]                                        # bf16, resident
    b_hn = jnp.broadcast_to(bhn_ref[...], (bt, hp))            # hoisted once

    def step(t, h):
        gi = gi_ref[t]                                         # (bt, 3*hp)
        gh = jnp.dot(h.astype(jnp.bfloat16), w_hh,
                     preferred_element_type=jnp.float32)       # only op on serial chain
        r = jax.nn.sigmoid(gi[:, 0:hp] + gh[:, 0:hp])
        z = jax.nn.sigmoid(gi[:, hp:2 * hp] + gh[:, hp:2 * hp])
        n = jnp.tanh(gi[:, 2 * hp:3 * hp] + r * (gh[:, 2 * hp:3 * hp] + b_hn))
        h = (1.0 - z) * n + z * h
        out_ref[t] = h                                         # lane-dense full-tile store
        return h

    h_ref[...] = lax.fori_loop(0, t_chunk, step, h_ref[...], unroll=True)


def init_params(key, input_size, hidden_size):
    ks = jax.random.split(key, 5)
    s = 0.1
    # Per-gate weights stored (in_features, out_features) so every matmul is x @ W.
    # Gate order matches PyTorch nn.GRU: (r, z, n).
    return {
        "emb":  jax.random.normal(ks[0], (input_size, hidden_size), jnp.float32) * s,
        "w_ih": jax.random.normal(ks[1], (3, hidden_size, hidden_size), jnp.float32) * s,
        "w_hh": jax.random.normal(ks[2], (3, hidden_size, hidden_size), jnp.float32) * s,
        "b_ih": jax.random.normal(ks[3], (3, hidden_size), jnp.float32) * s,
        "b_hh": jax.random.normal(ks[4], (3, hidden_size), jnp.float32) * s,
    }


def encoder_rnn_forward(params, input_ids):
    """EncoderRNN forward: returns (output (B, T, H), hidden (1, B, H))."""
    B, T = input_ids.shape
    V, H = params["emb"].shape

    H_pad = ((H + 127) // 128) * 128
    H3 = 3 * H_pad
    # Fat batch tile for non-toy batches (MXU occupancy + >=2 grid steps for
    # the two v7x TensorCores); small batches get one 8-sublane tile.
    B_TILE = 128 if B > 128 else ((B + 7) // 8) * 8
    B_pad = pl.cdiv(B, B_TILE) * B_TILE
    T_CHUNK = T if T < 8 else 8
    T_pad = pl.cdiv(T, T_CHUNK) * T_CHUNK

    # ---- embedding gather + dropout(eval = identity), outside the kernel ----
    x = params["emb"][input_ids.astype(jnp.int32)]             # (B, T, H) gather

    # ---- input-side projection for ALL timesteps (off the recurrent chain) ----
    def pad_gate_in(w):                                        # (H, H) -> (H, H_pad)
        return jnp.zeros((H, H_pad), jnp.float32).at[:, :H].set(w)

    def pad_bias(b):                                           # (H,) -> (H_pad,)
        return jnp.zeros((H_pad,), jnp.float32).at[:H].set(b)

    w_ih = jnp.concatenate([pad_gate_in(params["w_ih"][g]) for g in range(3)], axis=1)
    b_i = jnp.concatenate([
        pad_bias(params["b_ih"][0] + params["b_hh"][0]),       # r
        pad_bias(params["b_ih"][1] + params["b_hh"][1]),       # z
        pad_bias(params["b_ih"][2]),                           # n (input side only)
    ])
    gi = jnp.dot(x.reshape(B * T, H).astype(jnp.bfloat16),
                 w_ih.astype(jnp.bfloat16),
                 preferred_element_type=jnp.float32) + b_i     # (B*T, 3*H_pad)
    gi = gi.reshape(B, T, H3).transpose(1, 0, 2)               # time-major
    gi = jnp.zeros((T_pad, B_pad, H3), jnp.float32).at[:T, :B, :].set(gi)

    # ---- hidden-side weights, resident in the kernel (bf16 MXU operands) ----
    w_hh = jnp.concatenate(
        [jnp.zeros((H_pad, H_pad), jnp.float32).at[:H, :H].set(params["w_hh"][g])
         for g in range(3)], axis=1).astype(jnp.bfloat16)       # (H_pad, 3*H_pad)
    b_hn = jnp.zeros((1, H_pad), jnp.float32).at[0, :H].set(params["b_hh"][2])

    grid = (B_pad // B_TILE, T_pad // T_CHUNK)
    out_p = pl.pallas_call(
        _gru_chunk_kernel,
        out_shape=jax.ShapeDtypeStruct((T_pad, B_pad, H_pad), jnp.float32),
        grid=grid,
        in_specs=[
            pl.BlockSpec((T_CHUNK, B_TILE, H3), lambda b, tc: (tc, b, 0)),
            pl.BlockSpec((H_pad, H3), lambda b, tc: (0, 0),
                         pipeline_mode=pl.Buffered(1)),        # grid-invariant weights
            pl.BlockSpec((1, H_pad), lambda b, tc: (0, 0),
                         pipeline_mode=pl.Buffered(1)),
        ],
        out_specs=pl.BlockSpec((T_CHUNK, B_TILE, H_pad), lambda b, tc: (tc, b, 0)),
        scratch_shapes=[pltpu.VMEM((B_TILE, H_pad), jnp.float32)],
        compiler_params=pltpu.CompilerParams(
            dimension_semantics=("parallel", "arbitrary")),
        # NOTE: at production H (>=1024) also set vmem_limit_bytes; the toy
        # tiles here fit comfortably in the default scoped VMEM on v5e/v6e/v7x.
    )(gi, w_hh, b_hn)

    # Module contract: batch-first output + (1, B, H) hidden; the final hidden
    # equals the last time step, so no separate kernel output is needed.
    output = jnp.transpose(out_p[:T, :B, :H], (1, 0, 2))       # (B, T, H)
    hidden = out_p[T - 1, :B, :H][None]                        # (1, B, H)
    return output, hidden


def _reference(params, input_ids):
    """Pure-JAX f32 reference (PyTorch nn.Embedding + nn.GRU semantics, eval mode)."""
    x = params["emb"][input_ids]                               # (B, T, H)
    B, T, H = x.shape
    h = jnp.zeros((B, H), jnp.float32)
    outs = []
    for t in range(T):
        xt = x[:, t, :]
        r = jax.nn.sigmoid(xt @ params["w_ih"][0] + params["b_ih"][0]
                           + h @ params["w_hh"][0] + params["b_hh"][0])
        z = jax.nn.sigmoid(xt @ params["w_ih"][1] + params["b_ih"][1]
                           + h @ params["w_hh"][1] + params["b_hh"][1])
        n = jnp.tanh(xt @ params["w_ih"][2] + params["b_ih"][2]
                     + r * (h @ params["w_hh"][2] + params["b_hh"][2]))
        h = (1.0 - z) * n + z * h
        outs.append(h)
    return jnp.stack(outs, axis=1), h.reshape(1, B, H)


if __name__ == "__main__":
    batch, seq, hidden_size, vocab_size = 4, 8, 32, 64

    key = jax.random.PRNGKey(0)
    kp, ki = jax.random.split(key)
    params = init_params(kp, vocab_size, hidden_size)
    input_ids = jax.random.randint(ki, (batch, seq), 0, vocab_size, dtype=jnp.int32)

    out, hidden = encoder_rnn_forward(params, input_ids)
    out = jax.block_until_ready(out)
    hidden = jax.block_until_ready(hidden)

    assert out.shape == (batch, seq, hidden_size)
    assert hidden.shape == (1, batch, hidden_size)

    ref_out, ref_hidden = _reference(params, input_ids)
    # bf16 MXU operands vs f32 reference: errors are ~1e-3 at these scales.
    assert bool(jnp.allclose(out, ref_out, atol=1e-2, rtol=1e-2)), "output mismatch"
    assert bool(jnp.allclose(hidden, ref_hidden, atol=1e-2, rtol=1e-2)), "hidden mismatch"

    print("KERNEL_OK")
</pallas_src>

<mosaic_0001>
module attributes {stable_mosaic.version = 11 : i64} {
  func.func @_gru_chunk_kernel(%arg0: i32, %arg1: i32, %arg2: memref<8x8x384xf32, #tpu.memory_space<vmem>>, %arg3: memref<128x384xbf16, #tpu.memory_space<vmem>>, %arg4: memref<1x128xf32, #tpu.memory_space<vmem>>, %arg5: memref<8x8x128xf32, #tpu.memory_space<vmem>>, %arg6: memref<8x128xf32, #tpu.memory_space<vmem>>) attributes {dimension_semantics = [#tpu.dimension_semantics<parallel>, #tpu.dimension_semantics<arbitrary>], iteration_bounds = array<i64: 1, 1>, scalar_prefetch = 0 : i64, scratch_operands = 1 : i64, tpu.core_type = #tpu.core_type<tc>, window_params = [{transform_indices = @transform_0, window_bounds = array<i64: 8, 8, 384>}, {pipeline_mode = #tpu.pipeline_mode<synchronous>, transform_indices = @transform_1, window_bounds = array<i64: 128, 384>}, {pipeline_mode = #tpu.pipeline_mode<synchronous>, transform_indices = @transform_2, window_bounds = array<i64: 1, 128>}, {transform_indices = @transform_3, window_bounds = array<i64: 8, 8, 128>}]} {
    %c0_i32 = arith.constant 0 : i32
    %0 = arith.cmpi eq, %arg1, %c0_i32 : i32
    %1 = arith.extui %0 : i1 to i32
    %c0_i32_0 = arith.constant 0 : i32
    %2 = arith.cmpi ne, %1, %c0_i32_0 : i32
    scf.if %2 {
      %cst_72 = arith.constant 0.000000e+00 : f32
      %297 = vector.broadcast %cst_72 : f32 to vector<8x128xf32>
      %c0_73 = arith.constant 0 : index
      %c0_74 = arith.constant 0 : index
      %298 = vector.load %arg6[%c0_73, %c0_74] : memref<8x128xf32, #tpu.memory_space<vmem>>, vector<8x128xf32>
      tpu.vector_store %arg6[%c0_73, %c0_74], %297 {strides = array<i32>} : memref<8x128xf32, #tpu.memory_space<vmem>>, vector<8x128xf32>,
    } else {
    }
    %c0 = arith.constant 0 : index
    %c0_1 = arith.constant 0 : index
    %3 = vector.load %arg3[%c0, %c0_1] : memref<128x384xbf16, #tpu.memory_space<vmem>>, vector<128x384xbf16>
    %c0_2 = arith.constant 0 : index
    %c0_3 = arith.constant 0 : index
    %4 = vector.load %arg4[%c0_2, %c0_3] : memref<1x128xf32, #tpu.memory_space<vmem>>, vector<1x128xf32>
    %5 = vector.shape_cast %4 : vector<1x128xf32> to vector<1x128xf32>
    %6 = vector.broadcast %5 : vector<1x128xf32> to vector<8x128xf32>
    %c0_4 = arith.constant 0 : index
    %c0_5 = arith.constant 0 : index
    %7 = vector.load %arg6[%c0_4, %c0_5] : memref<8x128xf32, #tpu.memory_space<vmem>>, vector<8x128xf32>
    %c0_i32_6 = arith.constant 0 : i32
    %8 = arith.index_cast %c0_i32_6 : i32 to index
    %c0_7 = arith.constant 0 : index
    %c0_8 = arith.constant 0 : index
    %9 = vector.load %arg2[%8, %c0_7, %c0_8] : memref<8x8x384xf32, #tpu.memory_space<vmem>>, vector<1x8x384xf32>
    %10 = vector.shape_cast %9 : vector<1x8x384xf32> to vector<8x384xf32>
    %11 = arith.truncf %7 : vector<8x128xf32> to vector<8x128xbf16>
    %cst = arith.constant dense<0.000000e+00> : vector<8x384xf32>
    %12 = tpu.matmul %11, %3, %cst {dimension_numbers = #tpu.dot_dimension_numbers<[1], [0], [0], [1], [0, 0, 1, 1], [], []>} : vector<8x128xbf16>, vector<128x384xbf16>, vector<8x384xf32> -> vector<8x384xf32>
    %13 = vector.extract_strided_slice %10 {offsets = [0, 0], sizes = [8, 128], strides = [1, 1]} : vector<8x384xf32> to vector<8x128xf32>
    %14 = vector.extract_strided_slice %12 {offsets = [0, 0], sizes = [8, 128], strides = [1, 1]} : vector<8x384xf32> to vector<8x128xf32>
    %15 = arith.addf %13, %14 : vector<8x128xf32>
    %16 = arith.negf %15 : vector<8x128xf32>
    %17 = math.exp %16 : vector<8x128xf32>
    %cst_9 = arith.constant 1.000000e+00 : f32
    %18 = vector.broadcast %cst_9 : f32 to vector<8x128xf32>
    %19 = arith.addf %18, %17 : vector<8x128xf32>
    %20 = arith.divf %18, %19 : vector<8x128xf32>
    %21 = vector.extract_strided_slice %10 {offsets = [0, 128], sizes = [8, 128], strides = [1, 1]} : vector<8x384xf32> to vector<8x128xf32>
    %22 = vector.extract_strided_slice %12 {offsets = [0, 128], sizes = [8, 128], strides = [1, 1]} : vector<8x384xf32> to vector<8x128xf32>
    %23 = arith.addf %21, %22 : vector<8x128xf32>
    %24 = arith.negf %23 : vector<8x128xf32>
    %25 = math.exp %24 : vector<8x128xf32>
    %cst_10 = arith.constant 1.000000e+00 : f32
    %26 = vector.broadcast %cst_10 : f32 to vector<8x128xf32>
    %27 = arith.addf %26, %25 : vector<8x128xf32>
    %28 = arith.divf %26, %27 : vector<8x128xf32>
    %29 = vector.extract_strided_slice %10 {offsets = [0, 256], sizes = [8, 128], strides = [1, 1]} : vector<8x384xf32> to vector<8x128xf32>
    %30 = vector.extract_strided_slice %12 {offsets = [0, 256], sizes = [8, 128], strides = [1, 1]} : vector<8x384xf32> to vector<8x128xf32>
    %31 = arith.addf %30, %6 : vector<8x128xf32>
    %32 = arith.mulf %20, %31 : vector<8x128xf32>
    %33 = arith.addf %29, %32 : vector<8x128xf32>
    %34 = math.tanh %33 : vector<8x128xf32>
    %cst_11 = arith.constant 1.000000e+00 : f32
    %35 = vector.broadcast %cst_11 : f32 to vector<8x128xf32>
    %36 = arith.subf %35, %28 : vector<8x128xf32>
    %37 = arith.mulf %36, %34 : vector<8x128xf32>
    %38 = arith.mulf %28, %7 : vector<8x128xf32>
    %39 = arith.addf %37, %38 : vector<8x128xf32>
    %40 = arith.index_cast %c0_i32_6 : i32 to index
    %c0_12 = arith.constant 0 : index
    %c0_13 = arith.constant 0 : index
    %41 = vector.load %arg5[%40, %c0_12, %c0_13] : memref<8x8x128xf32, #tpu.memory_space<vmem>>, vector<1x8x128xf32>
    %42 = vector.shape_cast %41 : vector<1x8x128xf32> to vector<8x128xf32>
    %43 = vector.shape_cast %39 : vector<8x128xf32> to vector<1x8x128xf32>
    tpu.vector_store %arg5[%40, %c0_12, %c0_13], %43 {strides = array<i32>} : memref<8x8x128xf32, #tpu.memory_space<vmem>>, vector<1x8x128xf32>,
    %c1_i32 = arith.constant 1 : i32
    %44 = arith.index_cast %c1_i32 : i32 to index
    %c0_14 = arith.constant 0 : index
    %c0_15 = arith.constant 0 : index
    %45 = vector.load %arg2[%44, %c0_14, %c0_15] : memref<8x8x384xf32, #tpu.memory_space<vmem>>, vector<1x8x384xf32>
    %46 = vector.shape_cast %45 : vector<1x8x384xf32> to vector<8x384xf32>
    %47 = arith.truncf %39 : vector<8x128xf32> to vector<8x128xbf16>
    %cst_16 = arith.constant dense<0.000000e+00> : vector<8x384xf32>
    %48 = tpu.matmul %47, %3, %cst_16 {dimension_numbers = #tpu.dot_dimension_numbers<[1], [0], [0], [1], [0, 0, 1, 1], [], []>} : vector<8x128xbf16>, vector<128x384xbf16>, vector<8x384xf32> -> vector<8x384xf32>
    %49 = vector.extract_strided_slice %46 {offsets = [0, 0], sizes = [8, 128], strides = [1, 1]} : vector<8x384xf32> to vector<8x128xf32>
    %50 = vector.extract_strided_slice %48 {offsets = [0, 0], sizes = [8, 128], strides = [1, 1]} : vector<8x384xf32> to vector<8x128xf32>
    %51 = arith.addf %49, %50 : vector<8x128xf32>
    %52 = arith.negf %51 : vector<8x128xf32>
    %53 = math.exp %52 : vector<8x128xf32>
    %cst_17 = arith.constant 1.000000e+00 : f32
    %54 = vector.broadcast %cst_17 : f32 to vector<8x128xf32>
    %55 = arith.addf %54, %53 : vector<8x128xf32>
    %56 = arith.divf %54, %55 : vector<8x128xf32>
    %57 = vector.extract_strided_slice %46 {offsets = [0, 128], sizes = [8, 128], strides = [1, 1]} : vector<8x384xf32> to vector<8x128xf32>
    %58 = vector.extract_strided_slice %48 {offsets = [0, 128], sizes = [8, 128], strides = [1, 1]} : vector<8x384xf32> to vector<8x128xf32>
    %59 = arith.addf %57, %58 : vector<8x128xf32>
    %60 = arith.negf %59 : vector<8x128xf32>
    %61 = math.exp %60 : vector<8x128xf32>
    %cst_18 = arith.constant 1.000000e+00 : f32
    %62 = vector.broadcast %cst_18 : f32 to vector<8x128xf32>
    %63 = arith.addf %62, %61 : vector<8x128xf32>
    %64 = arith.divf %62, %63 : vector<8x128xf32>
    %65 = vector.extract_strided_slice %46 {offsets = [0, 256], sizes = [8, 128], strides = [1, 1]} : vector<8x384xf32> to vector<8x128xf32>
    %66 = vector.extract_strided_slice %48 {offsets = [0, 256], sizes = [8, 128], strides = [1, 1]} : vector<8x384xf32> to vector<8x128xf32>
    %67 = arith.addf %66, %6 : vector<8x128xf32>
    %68 = arith.mulf %56, %67 : vector<8x128xf32>
    %69 = arith.addf %65, %68 : vector<8x128xf32>
    %70 = math.tanh %69 : vector<8x128xf32>
    %cst_19 = arith.constant 1.000000e+00 : f32
    %71 = vector.broadcast %cst_19 : f32 to vector<8x128xf32>
    %72 = arith.subf %71, %64 : vector<8x128xf32>
    %73 = arith.mulf %72, %70 : vector<8x128xf32>
    %74 = arith.mulf %64, %39 : vector<8x128xf32>
    %75 = arith.addf %73, %74 : vector<8x128xf32>
    %76 = arith.index_cast %c1_i32 : i32 to index
    %c0_20 = arith.constant 0 : index
    %c0_21 = arith.constant 0 : index
    %77 = vector.load %arg5[%76, %c0_20, %c0_21] : memref<8x8x128xf32, #tpu.memory_space<vmem>>, vector<1x8x128xf32>
    %78 = vector.shape_cast %77 : vector<1x8x128xf32> to vector<8x128xf32>
    %79 = vector.shape_cast %75 : vector<8x128xf32> to vector<1x8x128xf32>
    tpu.vector_store %arg5[%76, %c0_20, %c0_21], %79 {strides = array<i32>} : memref<8x8x128xf32, #tpu.memory_space<vmem>>, vector<1x8x128xf32>,
    %c2_i32 = arith.constant 2 : i32
    %80 = arith.index_cast %c2_i32 : i32 to index
    %c0_22 = arith.constant 0 : index
    %c0_23 = arith.constant 0 : index
    %81 = vector.load %arg2[%80, %c0_22, %c0_23] : memref<8x8x384xf32, #tpu.memory_space<vmem>>, vector<1x8x384xf32>
    %82 = vector.shape_cast %81 : vector<1x8x384xf32> to vector<8x384xf32>
    %83 = arith.truncf %75 : vector<8x128xf32> to vector<8x128xbf16>
    %cst_24 = arith.constant dense<0.000000e+00> : vector<8x384xf32>
    %84 = tpu.matmul %83, %3, %cst_24 {dimension_numbers = #tpu.dot_dimension_numbers<[1], [0], [0], [1], [0, 0, 1, 1], [], []>} : vector<8x128xbf16>, vector<128x384xbf16>, vector<8x384xf32> -> vector<8x384xf32>
    %85 = vector.extract_strided_slice %82 {offsets = [0, 0], sizes = [8, 128], strides = [1, 1]} : vector<8x384xf32> to vector<8x128xf32>
    %86 = vector.extract_strided_slice %84 {offsets = [0, 0], sizes = [8, 128], strides = [1, 1]} : vector<8x384xf32> to vector<8x128xf32>
    %87 = arith.addf %85, %86 : vector<8x128xf32>
    %88 = arith.negf %87 : vector<8x128xf32>
    %89 = math.exp %88 : vector<8x128xf32>
    %cst_25 = arith.constant 1.000000e+00 : f32
    %90 = vector.broadcast %cst_25 : f32 to vector<8x128xf32>
    %91 = arith.addf %90, %89 : vector<8x128xf32>
    %92 = arith.divf %90, %91 : vector<8x128xf32>
    %93 = vector.extract_strided_slice %82 {offsets = [0, 128], sizes = [8, 128], strides = [1, 1]} : vector<8x384xf32> to vector<8x128xf32>
    %94 = vector.extract_strided_slice %84 {offsets = [0, 128], sizes = [8, 128], strides = [1, 1]} : vector<8x384xf32> to vector<8x128xf32>
    %95 = arith.addf %93, %94 : vector<8x128xf32>
    %96 = arith.negf %95 : vector<8x128xf32>
    %97 = math.exp %96 : vector<8x128xf32>
    %cst_26 = arith.constant 1.000000e+00 : f32
    %98 = vector.broadcast %cst_26 : f32 to vector<8x128xf32>
    %99 = arith.addf %98, %97 : vector<8x128xf32>
    %100 = arith.divf %98, %99 : vector<8x128xf32>
    %101 = vector.extract_strided_slice %82 {offsets = [0, 256], sizes = [8, 128], strides = [1, 1]} : vector<8x384xf32> to vector<8x128xf32>
    %102 = vector.extract_strided_slice %84 {offsets = [0, 256], sizes = [8, 128], strides = [1, 1]} : vector<8x384xf32> to vector<8x128xf32>
    %103 = arith.addf %102, %6 : vector<8x128xf32>
    %104 = arith.mulf %92, %103 : vector<8x128xf32>
    %105 = arith.addf %101, %104 : vector<8x128xf32>
    %106 = math.tanh %105 : vector<8x128xf32>
    %cst_27 = arith.constant 1.000000e+00 : f32
    %107 = vector.broadcast %cst_27 : f32 to vector<8x128xf32>
    %108 = arith.subf %107, %100 : vector<8x128xf32>
    %109 = arith.mulf %108, %106 : vector<8x128xf32>
    %110 = arith.mulf %100, %75 : vector<8x128xf32>
    %111 = arith.addf %109, %110 : vector<8x128xf32>
    %112 = arith.index_cast %c2_i32 : i32 to index
    %c0_28 = arith.constant 0 : index
    %c0_29 = arith.constant 0 : index
    %113 = vector.load %arg5[%112, %c0_28, %c0_29] : memref<8x8x128xf32, #tpu.memory_space<vmem>>, vector<1x8x128xf32>
    %114 = vector.shape_cast %113 : vector<1x8x128xf32> to vector<8x128xf32>
    %115 = vector.shape_cast %111 : vector<8x128xf32> to vector<1x8x128xf32>
    tpu.vector_store %arg5[%112, %c0_28, %c0_29], %115 {strides = array<i32>} : memref<8x8x128xf32, #tpu.memory_space<vmem>>, vector<1x8x128xf32>,
    %c3_i32 = arith.constant 3 : i32
    %116 = arith.index_cast %c3_i32 : i32 to index
    %c0_30 = arith.constant 0 : index
    %c0_31 = arith.constant 0 : index
    %117 = vector.load %arg2[%116, %c0_30, %c0_31] : memref<8x8x384xf32, #tpu.memory_space<vmem>>, vector<1x8x384xf32>
    %118 = vector.shape_cast %117 : vector<1x8x384xf32> to vector<8x384xf32>
    %119 = arith.truncf %111 : vector<8x128xf32> to vector<8x128xbf16>
    %cst_32 = arith.constant dense<0.000000e+00> : vector<8x384xf32>
    %120 = tpu.matmul %119, %3, %cst_32 {dimension_numbers = #tpu.dot_dimension_numbers<[1], [0], [0], [1], [0, 0, 1, 1], [], []>} : vector<8x128xbf16>, vector<128x384xbf16>, vector<8x384xf32> -> vector<8x384xf32>
    %121 = vector.extract_strided_slice %118 {offsets = [0, 0], sizes = [8, 128], strides = [1, 1]} : vector<8x384xf32> to vector<8x128xf32>
    %122 = vector.extract_strided_slice %120 {offsets = [0, 0], sizes = [8, 128], strides = [1, 1]} : vector<8x384xf32> to vector<8x128xf32>
    %123 = arith.addf %121, %122 : vector<8x128xf32>
    %124 = arith.negf %123 : vector<8x128xf32>
    %125 = math.exp %124 : vector<8x128xf32>
    %cst_33 = arith.constant 1.000000e+00 : f32
    %126 = vector.broadcast %cst_33 : f32 to vector<8x128xf32>
    %127 = arith.addf %126, %125 : vector<8x128xf32>
    %128 = arith.divf %126, %127 : vector<8x128xf32>
    %129 = vector.extract_strided_slice %118 {offsets = [0, 128], sizes = [8, 128], strides = [1, 1]} : vector<8x384xf32> to vector<8x128xf32>
    %130 = vector.extract_strided_slice %120 {offsets = [0, 128], sizes = [8, 128], strides = [1, 1]} : vector<8x384xf32> to vector<8x128xf32>
    %131 = arith.addf %129, %130 : vector<8x128xf32>
    %132 = arith.negf %131 : vector<8x128xf32>
    %133 = math.exp %132 : vector<8x128xf32>
    %cst_34 = arith.constant 1.000000e+00 : f32
    %134 = vector.broadcast %cst_34 : f32 to vector<8x128xf32>
    %135 = arith.addf %134, %133 : vector<8x128xf32>
    %136 = arith.divf %134, %135 : vector<8x128xf32>
    %137 = vector.extract_strided_slice %118 {offsets = [0, 256], sizes = [8, 128], strides = [1, 1]} : vector<8x384xf32> to vector<8x128xf32>
    %138 = vector.extract_strided_slice %120 {offsets = [0, 256], sizes = [8, 128], strides = [1, 1]} : vector<8x384xf32> to vector<8x128xf32>
    %139 = arith.addf %138, %6 : vector<8x128xf32>
    %140 = arith.mulf %128, %139 : vector<8x128xf32>
    %141 = arith.addf %137, %140 : vector<8x128xf32>
    %142 = math.tanh %141 : vector<8x128xf32>
    %cst_35 = arith.constant 1.000000e+00 : f32
    %143 = vector.broadcast %cst_35 : f32 to vector<8x128xf32>
    %144 = arith.subf %143, %136 : vector<8x128xf32>
    %145 = arith.mulf %144, %142 : vector<8x128xf32>
    %146 = arith.mulf %136, %111 : vector<8x128xf32>
    %147 = arith.addf %145, %146 : vector<8x128xf32>
    %148 = arith.index_cast %c3_i32 : i32 to index
    %c0_36 = arith.constant 0 : index
    %c0_37 = arith.constant 0 : index
    %149 = vector.load %arg5[%148, %c0_36, %c0_37] : memref<8x8x128xf32, #tpu.memory_space<vmem>>, vector<1x8x128xf32>
    %150 = vector.shape_cast %149 : vector<1x8x128xf32> to vector<8x128xf32>
    %151 = vector.shape_cast %147 : vector<8x128xf32> to vector<1x8x128xf32>
    tpu.vector_store %arg5[%148, %c0_36, %c0_37], %151 {strides = array<i32>} : memref<8x8x128xf32, #tpu.memory_space<vmem>>, vector<1x8x128xf32>,
    %c4_i32 = arith.constant 4 : i32
    %152 = arith.index_cast %c4_i32 : i32 to index
    %c0_38 = arith.constant 0 : index
    %c0_39 = arith.constant 0 : index
    %153 = vector.load %arg2[%152, %c0_38, %c0_39] : memref<8x8x384xf32, #tpu.memory_space<vmem>>, vector<1x8x384xf32>
    %154 = vector.shape_cast %153 : vector<1x8x384xf32> to vector<8x384xf32>
    %155 = arith.truncf %147 : vector<8x128xf32> to vector<8x128xbf16>
    %cst_40 = arith.constant dense<0.000000e+00> : vector<8x384xf32>
    %156 = tpu.matmul %155, %3, %cst_40 {dimension_numbers = #tpu.dot_dimension_numbers<[1], [0], [0], [1], [0, 0, 1, 1], [], []>} : vector<8x128xbf16>, vector<128x384xbf16>, vector<8x384xf32> -> vector<8x384xf32>
    %157 = vector.extract_strided_slice %154 {offsets = [0, 0], sizes = [8, 128], strides = [1, 1]} : vector<8x384xf32> to vector<8x128xf32>
    %158 = vector.extract_strided_slice %156 {offsets = [0, 0], sizes = [8, 128], strides = [1, 1]} : vector<8x384xf32> to vector<8x128xf32>
    %159 = arith.addf %157, %158 : vector<8x128xf32>
    %160 = arith.negf %159 : vector<8x128xf32>
    %161 = math.exp %160 : vector<8x128xf32>
    %cst_41 = arith.constant 1.000000e+00 : f32
    %162 = vector.broadcast %cst_41 : f32 to vector<8x128xf32>
    %163 = arith.addf %162, %161 : vector<8x128xf32>
    %164 = arith.divf %162, %163 : vector<8x128xf32>
    %165 = vector.extract_strided_slice %154 {offsets = [0, 128], sizes = [8, 128], strides = [1, 1]} : vector<8x384xf32> to vector<8x128xf32>
    %166 = vector.extract_strided_slice %156 {offsets = [0, 128], sizes = [8, 128], strides = [1, 1]} : vector<8x384xf32> to vector<8x128xf32>
    %167 = arith.addf %165, %166 : vector<8x128xf32>
    %168 = arith.negf %167 : vector<8x128xf32>
    %169 = math.exp %168 : vector<8x128xf32>
    %cst_42 = arith.constant 1.000000e+00 : f32
    %170 = vector.broadcast %cst_42 : f32 to vector<8x128xf32>
    %171 = arith.addf %170, %169 : vector<8x128xf32>
    %172 = arith.divf %170, %171 : vector<8x128xf32>
    %173 = vector.extract_strided_slice %154 {offsets = [0, 256], sizes = [8, 128], strides = [1, 1]} : vector<8x384xf32> to vector<8x128xf32>
    %174 = vector.extract_strided_slice %156 {offsets = [0, 256], sizes = [8, 128], strides = [1, 1]} : vector<8x384xf32> to vector<8x128xf32>
    %175 = arith.addf %174, %6 : vector<8x128xf32>
    %176 = arith.mulf %164, %175 : vector<8x128xf32>
    %177 = arith.addf %173, %176 : vector<8x128xf32>
    %178 = math.tanh %177 : vector<8x128xf32>
    %cst_43 = arith.constant 1.000000e+00 : f32
    %179 = vector.broadcast %cst_43 : f32 to vector<8x128xf32>
    %180 = arith.subf %179, %172 : vector<8x128xf32>
    %181 = arith.mulf %180, %178 : vector<8x128xf32>
    %182 = arith.mulf %172, %147 : vector<8x128xf32>
    %183 = arith.addf %181, %182 : vector<8x128xf32>
    %184 = arith.index_cast %c4_i32 : i32 to index
    %c0_44 = arith.constant 0 : index
    %c0_45 = arith.constant 0 : index
    %185 = vector.load %arg5[%184, %c0_44, %c0_45] : memref<8x8x128xf32, #tpu.memory_space<vmem>>, vector<1x8x128xf32>
    %186 = vector.shape_cast %185 : vector<1x8x128xf32> to vector<8x128xf32>
    %187 = vector.shape_cast %183 : vector<8x128xf32> to vector<1x8x128xf32>
    tpu.vector_store %arg5[%184, %c0_44, %c0_45], %187 {strides = array<i32>} : memref<8x8x128xf32, #tpu.memory_space<vmem>>, vector<1x8x128xf32>,
    %c5_i32 = arith.constant 5 : i32
    %188 = arith.index_cast %c5_i32 : i32 to index
    %c0_46 = arith.constant 0 : index
    %c0_47 = arith.constant 0 : index
    %189 = vector.load %arg2[%188, %c0_46, %c0_47] : memref<8x8x384xf32, #tpu.memory_space<vmem>>, vector<1x8x384xf32>
    %190 = vector.shape_cast %189 : vector<1x8x384xf32> to vector<8x384xf32>
    %191 = arith.truncf %183 : vector<8x128xf32> to vector<8x128xbf16>
    %cst_48 = arith.constant dense<0.000000e+00> : vector<8x384xf32>
    %192 = tpu.matmul %191, %3, %cst_48 {dimension_numbers = #tpu.dot_dimension_numbers<[1], [0], [0], [1], [0, 0, 1, 1], [], []>} : vector<8x128xbf16>, vector<128x384xbf16>, vector<8x384xf32> -> vector<8x384xf32>
    %193 = vector.extract_strided_slice %190 {offsets = [0, 0], sizes = [8, 128], strides = [1, 1]} : vector<8x384xf32> to vector<8x128xf32>
    %194 = vector.extract_strided_slice %192 {offsets = [0, 0], sizes = [8, 128], strides = [1, 1]} : vector<8x384xf32> to vector<8x128xf32>
    %195 = arith.addf %193, %194 : vector<8x128xf32>
    %196 = arith.negf %195 : vector<8x128xf32>
    %197 = math.exp %196 : vector<8x128xf32>
    %cst_49 = arith.constant 1.000000e+00 : f32
    %198 = vector.broadcast %cst_49 : f32 to vector<8x128xf32>
    %199 = arith.addf %198, %197 : vector<8x128xf32>
    %200 = arith.divf %198, %199 : vector<8x128xf32>
    %201 = vector.extract_strided_slice %190 {offsets = [0, 128], sizes = [8, 128], strides = [1, 1]} : vector<8x384xf32> to vector<8x128xf32>
    %202 = vector.extract_strided_slice %192 {offsets = [0, 128], sizes = [8, 128], strides = [1, 1]} : vector<8x384xf32> to vector<8x128xf32>
    %203 = arith.addf %201, %202 : vector<8x128xf32>
    %204 = arith.negf %203 : vector<8x128xf32>
    %205 = math.exp %204 : vector<8x128xf32>
    %cst_50 = arith.constant 1.000000e+00 : f32
    %206 = vector.broadcast %cst_50 : f32 to vector<8x128xf32>
    %207 = arith.addf %206, %205 : vector<8x128xf32>
    %208 = arith.divf %206, %207 : vector<8x128xf32>
    %209 = vector.extract_strided_slice %190 {offsets = [0, 256], sizes = [8, 128], strides = [1, 1]} : vector<8x384xf32> to vector<8x128xf32>
    %210 = vector.extract_strided_slice %192 {offsets = [0, 256], sizes = [8, 128], strides = [1, 1]} : vector<8x384xf32> to vector<8x128xf32>
    %211 = arith.addf %210, %6 : vector<8x128xf32>
    %212 = arith.mulf %200, %211 : vector<8x128xf32>
    %213 = arith.addf %209, %212 : vector<8x128xf32>
    %214 = math.tanh %213 : vector<8x128xf32>
    %cst_51 = arith.constant 1.000000e+00 : f32
    %215 = vector.broadcast %cst_51 : f32 to vector<8x128xf32>
    %216 = arith.subf %215, %208 : vector<8x128xf32>
    %217 = arith.mulf %216, %214 : vector<8x128xf32>
    %218 = arith.mulf %208, %183 : vector<8x128xf32>
    %219 = arith.addf %217, %218 : vector<8x128xf32>
    %220 = arith.index_cast %c5_i32 : i32 to index
    %c0_52 = arith.constant 0 : index
    %c0_53 = arith.constant 0 : index
    %221 = vector.load %arg5[%220, %c0_52, %c0_53] : memref<8x8x128xf32, #tpu.memory_space<vmem>>, vector<1x8x128xf32>
    %222 = vector.shape_cast %221 : vector<1x8x128xf32> to vector<8x128xf32>
    %223 = vector.shape_cast %219 : vector<8x128xf32> to vector<1x8x128xf32>
    tpu.vector_store %arg5[%220, %c0_52, %c0_53], %223 {strides = array<i32>} : memref<8x8x128xf32, #tpu.memory_space<vmem>>, vector<1x8x128xf32>,
    %c6_i32 = arith.constant 6 : i32
    %224 = arith.index_cast %c6_i32 : i32 to index
    %c0_54 = arith.constant 0 : index
    %c0_55 = arith.constant 0 : index
    %225 = vector.load %arg2[%224, %c0_54, %c0_55] : memref<8x8x384xf32, #tpu.memory_space<vmem>>, vector<1x8x384xf32>
    %226 = vector.shape_cast %225 : vector<1x8x384xf32> to vector<8x384xf32>
    %227 = arith.truncf %219 : vector<8x128xf32> to vector<8x128xbf16>
    %cst_56 = arith.constant dense<0.000000e+00> : vector<8x384xf32>
    %228 = tpu.matmul %227, %3, %cst_56 {dimension_numbers = #tpu.dot_dimension_numbers<[1], [0], [0], [1], [0, 0, 1, 1], [], []>} : vector<8x128xbf16>, vector<128x384xbf16>, vector<8x384xf32> -> vector<8x384xf32>
    %229 = vector.extract_strided_slice %226 {offsets = [0, 0], sizes = [8, 128], strides = [1, 1]} : vector<8x384xf32> to vector<8x128xf32>
    %230 = vector.extract_strided_slice %228 {offsets = [0, 0], sizes = [8, 128], strides = [1, 1]} : vector<8x384xf32> to vector<8x128xf32>
    %231 = arith.addf %229, %230 : vector<8x128xf32>
    %232 = arith.negf %231 : vector<8x128xf32>
    %233 = math.exp %232 : vector<8x128xf32>
    %cst_57 = arith.constant 1.000000e+00 : f32
    %234 = vector.broadcast %cst_57 : f32 to vector<8x128xf32>
    %235 = arith.addf %234, %233 : vector<8x128xf32>
    %236 = arith.divf %234, %235 : vector<8x128xf32>
    %237 = vector.extract_strided_slice %226 {offsets = [0, 128], sizes = [8, 128], strides = [1, 1]} : vector<8x384xf32> to vector<8x128xf32>
    %238 = vector.extract_strided_slice %228 {offsets = [0, 128], sizes = [8, 128], strides = [1, 1]} : vector<8x384xf32> to vector<8x128xf32>
    %239 = arith.addf %237, %238 : vector<8x128xf32>
    %240 = arith.negf %239 : vector<8x128xf32>
    %241 = math.exp %240 : vector<8x128xf32>
    %cst_58 = arith.constant 1.000000e+00 : f32
    %242 = vector.broadcast %cst_58 : f32 to vector<8x128xf32>
    %243 = arith.addf %242, %241 : vector<8x128xf32>
    %244 = arith.divf %242, %243 : vector<8x128xf32>
    %245 = vector.extract_strided_slice %226 {offsets = [0, 256], sizes = [8, 128], strides = [1, 1]} : vector<8x384xf32> to vector<8x128xf32>
    %246 = vector.extract_strided_slice %228 {offsets = [0, 256], sizes = [8, 128], strides = [1, 1]} : vector<8x384xf32> to vector<8x128xf32>
    %247 = arith.addf %246, %6 : vector<8x128xf32>
    %248 = arith.mulf %236, %247 : vector<8x128xf32>
    %249 = arith.addf %245, %248 : vector<8x128xf32>
    %250 = math.tanh %249 : vector<8x128xf32>
    %cst_59 = arith.constant 1.000000e+00 : f32
    %251 = vector.broadcast %cst_59 : f32 to vector<8x128xf32>
    %252 = arith.subf %251, %244 : vector<8x128xf32>
    %253 = arith.mulf %252, %250 : vector<8x128xf32>
    %254 = arith.mulf %244, %219 : vector<8x128xf32>
    %255 = arith.addf %253, %254 : vector<8x128xf32>
    %256 = arith.index_cast %c6_i32 : i32 to index
    %c0_60 = arith.constant 0 : index
    %c0_61 = arith.constant 0 : index
    %257 = vector.load %arg5[%256, %c0_60, %c0_61] : memref<8x8x128xf32, #tpu.memory_space<vmem>>, vector<1x8x128xf32>
    %258 = vector.shape_cast %257 : vector<1x8x128xf32> to vector<8x128xf32>
    %259 = vector.shape_cast %255 : vector<8x128xf32> to vector<1x8x128xf32>
    tpu.vector_store %arg5[%256, %c0_60, %c0_61], %259 {strides = array<i32>} : memref<8x8x128xf32, #tpu.memory_space<vmem>>, vector<1x8x128xf32>,
    %c7_i32 = arith.constant 7 : i32
    %260 = arith.index_cast %c7_i32 : i32 to index
    %c0_62 = arith.constant 0 : index
    %c0_63 = arith.constant 0 : index
    %261 = vector.load %arg2[%260, %c0_62, %c0_63] : memref<8x8x384xf32, #tpu.memory_space<vmem>>, vector<1x8x384xf32>
    %262 = vector.shape_cast %261 : vector<1x8x384xf32> to vector<8x384xf32>
    %263 = arith.truncf %255 : vector<8x128xf32> to vector<8x128xbf16>
    %cst_64 = arith.constant dense<0.000000e+00> : vector<8x384xf32>
    %264 = tpu.matmul %263, %3, %cst_64 {dimension_numbers = #tpu.dot_dimension_numbers<[1], [0], [0], [1], [0, 0, 1, 1], [], []>} : vector<8x128xbf16>, vector<128x384xbf16>, vector<8x384xf32> -> vector<8x384xf32>
    %265 = vector.extract_strided_slice %262 {offsets = [0, 0], sizes = [8, 128], strides = [1, 1]} : vector<8x384xf32> to vector<8x128xf32>
    %266 = vector.extract_strided_slice %264 {offsets = [0, 0], sizes = [8, 128], strides = [1, 1]} : vector<8x384xf32> to vector<8x128xf32>
    %267 = arith.addf %265, %266 : vector<8x128xf32>
    %268 = arith.negf %267 : vector<8x128xf32>
    %269 = math.exp %268 : vector<8x128xf32>
    %cst_65 = arith.constant 1.000000e+00 : f32
    %270 = vector.broadcast %cst_65 : f32 to vector<8x128xf32>
    %271 = arith.addf %270, %269 : vector<8x128xf32>
    %272 = arith.divf %270, %271 : vector<8x128xf32>
    %273 = vector.extract_strided_slice %262 {offsets = [0, 128], sizes = [8, 128], strides = [1, 1]} : vector<8x384xf32> to vector<8x128xf32>
    %274 = vector.extract_strided_slice %264 {offsets = [0, 128], sizes = [8, 128], strides = [1, 1]} : vector<8x384xf32> to vector<8x128xf32>
    %275 = arith.addf %273, %274 : vector<8x128xf32>
    %276 = arith.negf %275 : vector<8x128xf32>
    %277 = math.exp %276 : vector<8x128xf32>
    %cst_66 = arith.constant 1.000000e+00 : f32
    %278 = vector.broadcast %cst_66 : f32 to vector<8x128xf32>
    %279 = arith.addf %278, %277 : vector<8x128xf32>
    %280 = arith.divf %278, %279 : vector<8x128xf32>
    %281 = vector.extract_strided_slice %262 {offsets = [0, 256], sizes = [8, 128], strides = [1, 1]} : vector<8x384xf32> to vector<8x128xf32>
    %282 = vector.extract_strided_slice %264 {offsets = [0, 256], sizes = [8, 128], strides = [1, 1]} : vector<8x384xf32> to vector<8x128xf32>
    %283 = arith.addf %282, %6 : vector<8x128xf32>
    %284 = arith.mulf %272, %283 : vector<8x128xf32>
    %285 = arith.addf %281, %284 : vector<8x128xf32>
    %286 = math.tanh %285 : vector<8x128xf32>
    %cst_67 = arith.constant 1.000000e+00 : f32
    %287 = vector.broadcast %cst_67 : f32 to vector<8x128xf32>
    %288 = arith.subf %287, %280 : vector<8x128xf32>
    %289 = arith.mulf %288, %286 : vector<8x128xf32>
    %290 = arith.mulf %280, %255 : vector<8x128xf32>
    %291 = arith.addf %289, %290 : vector<8x128xf32>
    %292 = arith.index_cast %c7_i32 : i32 to index
    %c0_68 = arith.constant 0 : index
    %c0_69 = arith.constant 0 : index
    %293 = vector.load %arg5[%292, %c0_68, %c0_69] : memref<8x8x128xf32, #tpu.memory_space<vmem>>, vector<1x8x128xf32>
    %294 = vector.shape_cast %293 : vector<1x8x128xf32> to vector<8x128xf32>
    %295 = vector.shape_cast %291 : vector<8x128xf32> to vector<1x8x128xf32>
    tpu.vector_store %arg5[%292, %c0_68, %c0_69], %295 {strides = array<i32>} : memref<8x8x128xf32, #tpu.memory_space<vmem>>, vector<1x8x128xf32>,
    %c8_i32 = arith.constant 8 : i32
    %c0_70 = arith.constant 0 : index
    %c0_71 = arith.constant 0 : index
    %296 = vector.load %arg6[%c0_70, %c0_71] : memref<8x128xf32, #tpu.memory_space<vmem>>, vector<8x128xf32>
    tpu.vector_store %arg6[%c0_70, %c0_71], %291 {strides = array<i32>} : memref<8x128xf32, #tpu.memory_space<vmem>>, vector<8x128xf32>,
    return
  }
  func.func @transform_0(%arg0: i32, %arg1: i32) -> (i32, i32, i32) {
    %c0_i32 = arith.constant 0 : i32
    %c0_i32_0 = arith.constant 0 : i32
    return %arg1, %arg0, %c0_i32 : i32, i32, i32
  }
  func.func @transform_1(%arg0: i32, %arg1: i32) -> (i32, i32) {
    %c0_i32 = arith.constant 0 : i32
    %c0_i32_0 = arith.constant 0 : i32
    %c0_i32_1 = arith.constant 0 : i32
    return %c0_i32, %c0_i32_0 : i32, i32
  }
  func.func @transform_2(%arg0: i32, %arg1: i32) -> (i32, i32) {
    %c0_i32 = arith.constant 0 : i32
    %c0_i32_0 = arith.constant 0 : i32
    %c0_i32_1 = arith.constant 0 : i32
    return %c0_i32, %c0_i32_0 : i32, i32
  }
  func.func @transform_3(%arg0: i32, %arg1: i32) -> (i32, i32, i32) {
    %c0_i32 = arith.constant 0 : i32
    %c0_i32_0 = arith.constant 0 : i32
    return %arg1, %arg0, %c0_i32 : i32, i32, i32
  }
}

</mosaic_0001>

<bundles_post_ra>
// kernel: tpu_custom_call.1
= control target key start
LH: loop header
LB: loop body
LE: loop exit
PB: predicated region body
PF: predicated region fallthrough
CT: control target
= control target key end

     0   :  { %8 = vsyncpa [#allocation4], 0  ;;  %s1624_s0 = inlined_call_operand.hbm [shape: f32[8,8,384], index: 0, kind: input, shape index: {}]   ;;  %s1625_s1 = inlined_call_operand.hbm [shape: bf16[128,384], index: 1, kind: input, shape index: {}]   ;;  %s1626_s2 = inlined_call_operand.vmem [shape: f32[1,128], index: 2, kind: input, shape index: {}]   ;;  %s1627_s3 = inlined_call_operand.hbm [shape: f32[8,8,128], index: 3, kind: output, shape index: {}]  }
   0x1   :  { %9 = vsyncpa [#allocation7], 0 }
   0x2   :  { %10 = vsyncpa [#allocation5], 0  ;;  %s15_s14 = sshll.u32 %s1624_s0, 4  ;;  %s1294_s15 = smov [#allocation3]   ;;  %s16_s14 = int_to_ptr.hbm [resolvable:$true] %s15_s14 }
   0x3   :  { %s17_s16 = sshll.u32 %s1294_s15, 4  ;;  %s28_s19 = sshll.u32 %s1625_s1, 4  ;;  %s18_s16 = int_to_ptr.vmem [resolvable:$true] %s17_s16  ;;  %s29_s19 = int_to_ptr.hbm [resolvable:$true] %s28_s19 }
   0x4   :  { %s1295_s20 = smov 384   ;;  %s1296_s21 = smov 24  }
   0x5   :  { %23 = dma.hbm_to_vmem [thread:$0]  %s16_s14, 3072, %s18_s16, [#allocation4], %s1295_s20, %s1295_s20, %s1296_s21  }
   0x6   :  { %s1297_s22 = smov [#allocation6]   ;;  %s1298_s24 = smov 192  }
   0x7   :  { %s30_s23 = sshll.u32 %s1297_s22, 4  ;;  %s1299_s25 = smov 12   ;;  %s31_s23 = int_to_ptr.vmem [resolvable:$true] %s30_s23 }
   0x8   :  { %36 = dma.hbm_to_vmem [thread:$0]  %s29_s19, 3072, %s31_s23, [#allocation7], %s1298_s24, %s1298_s24, %s1299_s25  }
   0x9   :  { %1288 = dma.done.wait [#allocation4], 3072  }
   0xa   :  { %1289 = vsyncadd [#allocation4], 4294964224 }
   0xb   :  { %1290 = dma.done.wait [#allocation7], 3072  }
   0xc   :  { %1291 = vsyncadd [#allocation7], 4294964224  ;;  %v1074_v0 = vld [vmem:[#allocation6 + $0xa8] sm:$0xf]  ;;  %v1122_v1 = vld [vmem:[#allocation6 + $0xb0] sm:$0xf0] }
   0xd   :  { %v1121_v2 = vld [vmem:[#allocation6 + $0xac] sm:$0xf]  ;;  %v1330_v3 = vor.u32 %v1122_v1, %v1074_v0  ;;  %v1076_v4 = vld [vmem:[#allocation6 + $0xb4] sm:$0xf0]  ;;  %v1062_v5 = vld [vmem:[#allocation6 + $0x90] sm:$0xf] }
   0xe   :  { %v1119_v6 = vld [vmem:[#allocation6 + $0x98] sm:$0xf0]  ;;  %v1332_v7 = vor.u32 %v1121_v2, %v1076_v4  ;;  %v1118_v8 = vld [vmem:[#allocation6 + $0x94] sm:$0xf]  ;;  %v1064_v9 = vld [vmem:[#allocation6 + $0x9c] sm:$0xf0] }
   0xf   :  { %221 = vmatpush.bf16.msra.mxu0 %v1330_v3  ;;  %v1335_v10 = vor.u32 %v1119_v6, %v1062_v5  ;;  %314 = vmatpush.bf16.msra.mxu3 %v1330_v3  ;;  %v1339_v11 = vor.u32 %v1118_v8, %v1064_v9  ;;  %v1050_v12 = vld [vmem:[#allocation6 + $0x78] sm:$0xf]  ;;  %v1116_v13 = vld [vmem:[#allocation6 + $0x80] sm:$0xf0]  ;;  %v1115_v14 = vld [vmem:[#allocation6 + $0x7c] sm:$0xf] }
  0x10   :  { %234 = vmatpush.bf16.msra.mxu1 %v1332_v7  ;;  %v1052_v15 = vld [vmem:[#allocation6 + $0x84] sm:$0xf0]  ;;  %v1082_v16 = vld [vmem:[#allocation6 + $0xb0] sm:$0xf]  ;;  %v1123_v17 = vld [vmem:[#allocation6 + $0xb8] sm:$0xf0]  ;;  %v1344_v19 = vor.u32 %v1116_v13, %v1050_v12 }
  0x11   :  { %v1341_v18 = vor.u32 %v1123_v17, %v1082_v16  ;;  %v1070_v20 = vld [vmem:[#allocation6 + $0x98] sm:$0xf]  ;;  %v1120_v21 = vld [vmem:[#allocation6 + $0xa0] sm:$0xf0]  ;;  %v1348_v22 = vor.u32 %v1115_v14, %v1052_v15  ;;  %v1038_v23 = vld [vmem:[#allocation6 + $0x60] sm:$0xf] }
  0x12   :  { %v1113_v24 = vld [vmem:[#allocation6 + $0x68] sm:$0xf0]  ;;  %v1112_v25 = vld [vmem:[#allocation6 + $0x64] sm:$0xf]  ;;  %v1351_v26 = vor.u32 %v1120_v21, %v1070_v20  ;;  %v1040_v27 = vld [vmem:[#allocation6 + $0x6c] sm:$0xf0] }
  0x13   :  { %222 = vmatpush.bf16.msra.mxu0 %v1335_v10  ;;  %315 = vmatpush.bf16.msra.mxu3 %v1335_v10  ;;  %v1058_v28 = vld [vmem:[#allocation6 + $0x80] sm:$0xf]  ;;  %v1117_v29 = vld [vmem:[#allocation6 + $0x88] sm:$0xf0]  ;;  %v1354_v30 = vor.u32 %v1113_v24, %v1038_v23  ;;  %v1358_v31 = vor.u32 %v1112_v25, %v1040_v27  ;;  %v1026_v32 = vld [vmem:[#allocation6 + $0x48] sm:$0xf] }
  0x14   :  { %235 = vmatpush.bf16.msra.mxu1 %v1339_v11  ;;  %247 = vmatpush.bf16.msra.mxu2 %v1341_v18  ;;  %v1110_v33 = vld [vmem:[#allocation6 + $0x50] sm:$0xf0]  ;;  %v1109_v34 = vld [vmem:[#allocation6 + $0x4c] sm:$0xf]  ;;  %v1361_v35 = vor.u32 %v1117_v29, %v1058_v28  ;;  %v1028_v36 = vld [vmem:[#allocation6 + $0x54] sm:$0xf0] }
  0x15   :  { %v1046_v37 = vld [vmem:[#allocation6 + $0x68] sm:$0xf]  ;;  %v1114_v38 = vld [vmem:[#allocation6 + $0x70] sm:$0xf0]  ;;  %v1364_v39 = vor.u32 %v1110_v33, %v1026_v32  ;;  %v1014_v40 = vld [vmem:[#allocation6 + $0x30] sm:$0xf]  ;;  %v1368_v41 = vor.u32 %v1109_v34, %v1028_v36 }
  0x16   :  { %v1107_v42 = vld [vmem:[#allocation6 + $0x38] sm:$0xf0]  ;;  %v1106_v43 = vld [vmem:[#allocation6 + $0x34] sm:$0xf]  ;;  %v1371_v44 = vor.u32 %v1114_v38, %v1046_v37  ;;  %v1016_v45 = vld [vmem:[#allocation6 + $0x3c] sm:$0xf0] }
  0x17   :  { %223 = vmatpush.bf16.msra.mxu0 %v1344_v19  ;;  %316 = vmatpush.bf16.msra.mxu3 %v1344_v19  ;;  %v1034_v46 = vld [vmem:[#allocation6 + $0x50] sm:$0xf]  ;;  %v1111_v47 = vld [vmem:[#allocation6 + $0x58] sm:$0xf0]  ;;  %v1374_v48 = vor.u32 %v1107_v42, %v1014_v40  ;;  %v1378_v49 = vor.u32 %v1106_v43, %v1016_v45  ;;  %v1002_v50 = vld [vmem:[#allocation6 + $0x18] sm:$0xf] }
  0x18   :  { %236 = vmatpush.bf16.msra.mxu1 %v1348_v22  ;;  %248 = vmatpush.bf16.msra.mxu2 %v1351_v26  ;;  %v1104_v51 = vld [vmem:[#allocation6 + $0x20] sm:$0xf0]  ;;  %v1103_v52 = vld [vmem:[#allocation6 + $0x1c] sm:$0xf]  ;;  %v1381_v53 = vor.u32 %v1111_v47, %v1034_v46  ;;  %v1004_v54 = vld [vmem:[#allocation6 + $0x24] sm:$0xf0] }
  0x19   :  { %v1022_v55 = vld [vmem:[#allocation6 + $0x38] sm:$0xf]  ;;  %v1108_v56 = vld [vmem:[#allocation6 + $0x40] sm:$0xf0]  ;;  %v1384_v57 = vor.u32 %v1104_v51, %v1002_v50  ;;  %v1388_v58 = vor.u32 %v1103_v52, %v1004_v54  ;;  %v990_v59 = vld [vmem:[#allocation6] sm:$0xf] }
  0x1a   :  { %v1101_v60 = vld [vmem:[#allocation6 + $0x8] sm:$0xf0]  ;;  %v1100_v61 = vld [vmem:[#allocation6 + $0x4] sm:$0xf]  ;;  %v1391_v62 = vor.u32 %v1108_v56, %v1022_v55  ;;  %v992_v63 = vld [vmem:[#allocation6 + $0xc] sm:$0xf0] }
  0x1b   :  { %224 = vmatpush.bf16.msra.mxu0 %v1354_v30  ;;  %317 = vmatpush.bf16.msra.mxu3 %v1354_v30  ;;  %v1010_v0 = vld [vmem:[#allocation6 + $0x20] sm:$0xf]  ;;  %v1105_v1 = vld [vmem:[#allocation6 + $0x28] sm:$0xf0]  ;;  %v1394_v2 = vor.u32 %v1101_v60, %v990_v59  ;;  %v1398_v4 = vor.u32 %v1100_v61, %v992_v63  ;;  %v998_v6 = vld [vmem:[#allocation6 + $0x8] sm:$0xf] }
  0x1c   :  { %237 = vmatpush.bf16.msra.mxu1 %v1358_v31  ;;  %249 = vmatpush.bf16.msra.mxu2 %v1361_v35  ;;  %v1401_v5 = vor.u32 %v1105_v1, %v1010_v0  ;;  %v1102_v8 = vld [vmem:[#allocation6 + $0x10] sm:$0xf0]  ;;  %v1300_v12 = vmov 0.0|0.0   ;;  %v89_v13 = vld [vmem:[#allocation3] sm:$0xff]  ;;  %v90_v14 = vld [vmem:[#allocation3 + $0x8] sm:$0xff]  ;;  %s1301_s28 = smov [#allocation8]  }
  0x1d   :  { %v1407_v9 = vor.u32 %v1102_v8, %v998_v6  ;;  %v1469_v42 = vld [vmem:[%s1626_s2] ss:$0 sm:$0xff]  ;;  %v91_v59 = vld [vmem:[#allocation3 + $0x10] sm:$0xff]  ;;  %s974_s4 = sshll.u32 %s1627_s3, 4  ;;  %s1302_s5 = smov 128   ;;  %s975_s4 = int_to_ptr.hbm [resolvable:$true] %s974_s4 }
  0x1e   :  { %s1303_s6 = smov 8  }
  0x1f   :  { %225 = vmatpush.bf16.msra.mxu0 %v1364_v39  ;;  %318 = vmatpush.bf16.msra.mxu3 %v1364_v39 }
  0x20   :  { %238 = vmatpush.bf16.msra.mxu1 %v1368_v41  ;;  %250 = vmatpush.bf16.msra.mxu2 %v1371_v44 }
  0x23   :  { %226 = vmatpush.bf16.msra.mxu0 %v1374_v48  ;;  %319 = vmatpush.bf16.msra.mxu3 %v1374_v48 }
  0x24   :  { %239 = vmatpush.bf16.msra.mxu1 %v1378_v49  ;;  %251 = vmatpush.bf16.msra.mxu2 %v1381_v53 }
  0x27   :  { %227 = vmatpush.bf16.msra.mxu0 %v1384_v57  ;;  %320 = vmatpush.bf16.msra.mxu3 %v1384_v57 }
  0x28   :  { %240 = vmatpush.bf16.msra.mxu1 %v1388_v58  ;;  %252 = vmatpush.bf16.msra.mxu2 %v1391_v62 }
  0x2b   :  { %228 = vmatpush.bf16.msra.mxu0 %v1394_v2  ;;  %321 = vmatpush.bf16.msra.mxu3 %v1394_v2 }
  0x2c   :  { %241 = vmatpush.bf16.msra.mxu1 %v1398_v4  ;;  %253 = vmatpush.bf16.msra.mxu2 %v1401_v5 }
  0x2e   :  { %229 = vmatmul.bf16.vlgmr.msra.gmra.mxu0 %v1300_v12 }
  0x2f   :  { %327 = vmatpush.bf16.msrb.mxu0 %v1332_v7  ;;  %421 = vmatpush.bf16.msrb.mxu3 %v1332_v7 }
  0x30   :  { %340 = vmatpush.bf16.msrb.mxu1 %v1341_v18  ;;  %254 = vmatpush.bf16.msra.mxu2 %v1407_v9 }
  0x31   :  { %242 = vmatmul.bf16.vlgmr.msra.gmra.mxu1 %v1300_v12 }
  0x33   :  { %328 = vmatpush.bf16.msrb.mxu0 %v1339_v11  ;;  %422 = vmatpush.bf16.msrb.mxu3 %v1339_v11 }
  0x34   :  { %341 = vmatpush.bf16.msrb.mxu1 %v1351_v26  ;;  %408 = vmatpush.bf16.msrb.mxu2 %v1330_v3 }
  0x35   :  { %255 = vmatmul.bf16.vlgmr.msra.gmra.mxu2 %v1300_v12 }
  0x37   :  { %329 = vmatpush.bf16.msrb.mxu0 %v1348_v22  ;;  %423 = vmatpush.bf16.msrb.mxu3 %v1348_v22 }
  0x38   :  { %342 = vmatpush.bf16.msrb.mxu1 %v1361_v35  ;;  %409 = vmatpush.bf16.msrb.mxu2 %v1335_v10 }
  0x3b   :  { %330 = vmatpush.bf16.msrb.mxu0 %v1358_v31  ;;  %424 = vmatpush.bf16.msrb.mxu3 %v1358_v31 }
  0x3c   :  { %343 = vmatpush.bf16.msrb.mxu1 %v1371_v44  ;;  %410 = vmatpush.bf16.msrb.mxu2 %v1344_v19 }
  0x3f   :  { %331 = vmatpush.bf16.msrb.mxu0 %v1368_v41  ;;  %425 = vmatpush.bf16.msrb.mxu3 %v1368_v41 }
  0x40   :  { %344 = vmatpush.bf16.msrb.mxu1 %v1381_v53  ;;  %411 = vmatpush.bf16.msrb.mxu2 %v1354_v30 }
  0x43   :  { %332 = vmatpush.bf16.msrb.mxu0 %v1378_v49  ;;  %426 = vmatpush.bf16.msrb.mxu3 %v1378_v49 }
  0x44   :  { %345 = vmatpush.bf16.msrb.mxu1 %v1391_v62  ;;  %412 = vmatpush.bf16.msrb.mxu2 %v1364_v39 }
  0x47   :  { %333 = vmatpush.bf16.msrb.mxu0 %v1388_v58  ;;  %427 = vmatpush.bf16.msrb.mxu3 %v1388_v58 }
  0x48   :  { %346 = vmatpush.bf16.msrb.mxu1 %v1401_v5  ;;  %413 = vmatpush.bf16.msrb.mxu2 %v1374_v48 }
  0x4b   :  { %334 = vmatpush.bf16.msrb.mxu0 %v1398_v4  ;;  %428 = vmatpush.bf16.msrb.mxu3 %v1398_v4 }
  0x4c   :  { %347 = vmatpush.bf16.msrb.mxu1 %v1407_v9  ;;  %414 = vmatpush.bf16.msrb.mxu2 %v1384_v57 }
  0x4f   :  { %434 = vmatpush.bf16.msra.mxu0 %v1341_v18 }
  0x50   :  { %502 = vmatpush.bf16.msra.mxu1 %v1330_v3  ;;  %415 = vmatpush.bf16.msrb.mxu2 %v1394_v2 }
  0x53   :  { %435 = vmatpush.bf16.msra.mxu0 %v1351_v26 }
  0x54   :  { %515 = vmatpush.bf16.msra.mxu2 %v1332_v7  ;;  %503 = vmatpush.bf16.msra.mxu1 %v1335_v10 }
  0x57   :  { %436 = vmatpush.bf16.msra.mxu0 %v1361_v35 }
  0x58   :  { %516 = vmatpush.bf16.msra.mxu2 %v1339_v11  ;;  %504 = vmatpush.bf16.msra.mxu1 %v1344_v19 }
  0x5b   :  { %437 = vmatpush.bf16.msra.mxu0 %v1371_v44 }
  0x5c   :  { %517 = vmatpush.bf16.msra.mxu2 %v1348_v22  ;;  %505 = vmatpush.bf16.msra.mxu1 %v1354_v30 }
  0x5f   :  { %438 = vmatpush.bf16.msra.mxu0 %v1381_v53 }
  0x60   :  { %518 = vmatpush.bf16.msra.mxu2 %v1358_v31  ;;  %506 = vmatpush.bf16.msra.mxu1 %v1364_v39 }
  0x63   :  { %439 = vmatpush.bf16.msra.mxu0 %v1391_v62 }
  0x64   :  { %519 = vmatpush.bf16.msra.mxu2 %v1368_v41  ;;  %507 = vmatpush.bf16.msra.mxu1 %v1374_v48 }
  0x67   :  { %440 = vmatpush.bf16.msra.mxu0 %v1401_v5 }
  0x68   :  { %520 = vmatpush.bf16.msra.mxu2 %v1378_v49  ;;  %508 = vmatpush.bf16.msra.mxu1 %v1384_v57 }
  0x6b   :  { %441 = vmatpush.bf16.msra.mxu0 %v1407_v9 }
  0x6c   :  { %521 = vmatpush.bf16.msra.mxu2 %v1388_v58  ;;  %509 = vmatpush.bf16.msra.mxu1 %v1394_v2 }
  0x70   :  { %522 = vmatpush.bf16.msra.mxu2 %v1398_v4 }
  0xab   :  { %v230_v15 = vpop.f32.mrf.mxu0 }
  0xac   :  { %v260_v16 = vadd.f32 %v230_v15, %v89_v13 }
  0xae   :  { %v243_v17 = vpop.f32.mrf.mxu1  ;;  %v1084_v21 = vmul.f32 -1.442695, %v260_v16 }
  0xaf   :  { %v280_v20 = vadd.f32 %v243_v17, %v90_v14 }
  0xb0   :  { %1135 = vpow2.f32 %v1084_v21 }
  0xb1   :  { %v1085_v23 = vmul.f32 -1.442695, %v280_v20 }
  0xb3   :  { %1137 = vpow2.f32 %v1085_v23  ;;  %v232_v24 = vpop.f32.mrf.mxu0  ;;  %v311_v23 = vld [vmem:[#allocation3 + $0x20] sm:$0xff] }
  0xb6   :  { %v245_v25 = vpop.f32.mrf.mxu1  ;;  %v1136_v27 = vpop.eup %1135 }
  0xb7   :  { %v264_v32 = vadd.f32 1.0, %v1136_v27 }
  0xb8   :  { %v256_v28 = vpop.f32.mrf.mxu2 }
  0xb9   :  { %v1138_v29 = vpop.eup %1137  ;;  %1139 = vrcp.f32 %v264_v32  ;;  %v276_v46 = vand.u32 2147483648, %v264_v32  ;;  %v274_v50 = vand.u32 2147483647, %v264_v32  ;;  %vm270_vm1 = vweird.f32 %v264_v32 }
  0xba   :  { %v284_v33 = vadd.f32 1.0, %v1138_v29  ;;  %v300_v54 = vadd.f32 %v1469_v42, %v256_v28  ;;  %v310_v29 = vld [vmem:[#allocation3 + $0x18] sm:$0xff] }
  0xbb   :  { %v277_v55 = vor.u32 1.1754944e-38, %v276_v46  ;;  %vm275_vm3 = vcmp.eq.f32.partialorder %v274_v50, 8.507059e+37 }
  0xbc   :  { %1141 = vrcp.f32 %v284_v33  ;;  %vm290_vm4 = vweird.f32 %v284_v33  ;;  %v296_v63 = vand.u32 2147483648, %v284_v33  ;;  %v294_v1 = vand.u32 2147483647, %v284_v33 }
  0xbe   :  { %v297_v12 = vor.u32 1.1754944e-38, %v296_v63  ;;  %vm295_vm7 = vcmp.eq.f32.partialorder %v294_v1, 8.507059e+37 }
  0xbf   :  { %v1140_v36 = vpop.eup %1139 }
  0xc0   :  { %v258_v34 = vpop.f32.mrf.mxu2  ;;  %v266_v38 = vmul.f32 %v1140_v36, %v264_v32  ;;  %vm271_vm0 = vweird.f32 %v1140_v36 }
  0xc1   :  { %vm272_vm2 = vmor %vm270_vm1, %vm271_vm0 }
  0xc2   :  { %v1142_v37 = vpop.eup %1141  ;;  %v267_v43 = vsub.f32 1.0, %v266_v38 }
  0xc3   :  { %v286_v40 = vmul.f32 %v1142_v37, %v284_v33  ;;  %vm291_vm5 = vweird.f32 %v1142_v37 }
  0xc4   :  { %v268_v47 = vmul.f32 %v1140_v36, %v267_v43  ;;  %vm292_vm6 = vmor %vm290_vm4, %vm291_vm5 }
  0xc5   :  { %v287_v45 = vsub.f32 1.0, %v286_v40 }
  0xc6   :  { %v269_v52 = vadd.f32 %v1140_v36, %v268_v47 }
  0xc7   :  { %v288_v51 = vmul.f32 %v1142_v37, %v287_v45 }
  0xc8   :  { %v273_v56 = vsel %vm272_vm2, %v1140_v36, %v269_v52 }
  0xc9   :  { %v278_v60 = vsel %vm275_vm3, %v277_v55, %v273_v56  ;;  %v289_v61 = vadd.f32 %v1142_v37, %v288_v51 }
  0xca   :  { %v301_v0 = vmul.f32 %v300_v54, %v278_v60 }
  0xcb   :  { %v293_v8 = vsel %vm292_vm6, %v1142_v37, %v289_v61 }
  0xcc   :  { %v302_v6 = vadd.f32 %v301_v0, %v91_v59  ;;  %v298_v13 = vsel %vm295_vm7, %v297_v12, %v293_v8  ;;  %v312_v12 = vld [vmem:[#allocation3 + $0x28] sm:$0xff] }
  0xcd   :  { %v304_v14 = vsub.f32 1.0, %v298_v13  ;;  %v306_v17 = vmul.f32 0.0, %v298_v13 }
  0xce   :  { %1143 = vtanh.f32 %v302_v6 }
  0xd4   :  { %v1144_v15 = vpop.eup %1143 }
  0xd5   :  { %v305_v16 = vmul.f32 %v1144_v15, %v304_v14 }
  0xd7   :  { %v1472_v20 = vadd.f32 %v306_v17, %v305_v16 }
  0xd9   :  { %308 = vst [vmem:[#allocation8] sm:$0xff] %v1472_v20  ;;  %v313_v21 = vpack.c.bf16 %v1472_v20, %v1472_v20 }
  0xdb   :  { %322 = vmatmul.bf16.vlgmr.msra.gmra.mxu3 %v313_v21  ;;  %335 = vmatmul.bf16.vlgmr.msrb.gmra.mxu0 %v313_v21 }
  0xdc   :  { %348 = vmatmul.bf16.vlgmr.msrb.gmra.mxu1 %v313_v21  ;;  %528 = vmatpush.bf16.msra.mxu3 %v1341_v18 }
  0xdd   :  { %596 = vmatpush.bf16.msrb.mxu0 %v1330_v3  ;;  %609 = vmatpush.bf16.msrb.mxu1 %v1332_v7 }
  0xe0   :  { %529 = vmatpush.bf16.msra.mxu3 %v1351_v26 }
  0xe1   :  { %597 = vmatpush.bf16.msrb.mxu0 %v1335_v10  ;;  %610 = vmatpush.bf16.msrb.mxu1 %v1339_v11 }
  0xe4   :  { %530 = vmatpush.bf16.msra.mxu3 %v1361_v35 }
  0xe5   :  { %598 = vmatpush.bf16.msrb.mxu0 %v1344_v19  ;;  %611 = vmatpush.bf16.msrb.mxu1 %v1348_v22 }
  0xe8   :  { %531 = vmatpush.bf16.msra.mxu3 %v1371_v44 }
  0xe9   :  { %599 = vmatpush.bf16.msrb.mxu0 %v1354_v30  ;;  %612 = vmatpush.bf16.msrb.mxu1 %v1358_v31 }
  0xec   :  { %532 = vmatpush.bf16.msra.mxu3 %v1381_v53 }
  0xed   :  { %600 = vmatpush.bf16.msrb.mxu0 %v1364_v39  ;;  %613 = vmatpush.bf16.msrb.mxu1 %v1368_v41 }
  0xf0   :  { %533 = vmatpush.bf16.msra.mxu3 %v1391_v62 }
  0xf1   :  { %601 = vmatpush.bf16.msrb.mxu0 %v1374_v48  ;;  %614 = vmatpush.bf16.msrb.mxu1 %v1378_v49 }
  0xf4   :  { %534 = vmatpush.bf16.msra.mxu3 %v1401_v5 }
  0xf5   :  { %602 = vmatpush.bf16.msrb.mxu0 %v1384_v57  ;;  %615 = vmatpush.bf16.msrb.mxu1 %v1388_v58 }
  0xf8   :  { %535 = vmatpush.bf16.msra.mxu3 %v1407_v9 }
  0xf9   :  { %603 = vmatpush.bf16.msrb.mxu0 %v1394_v2  ;;  %616 = vmatpush.bf16.msrb.mxu1 %v1398_v4 }
 0x158   :  { %v336_v24 = vpop.f32.mrf.mxu0 }
 0x159   :  { %v373_v25 = vadd.f32 %v336_v24, %v311_v23  ;;  %v349_v27 = vpop.f32.mrf.mxu1 }
 0x15a   :  { %v393_v1 = vadd.f32 %v1469_v42, %v349_v27 }
 0x15b   :  { %v1087_v28 = vmul.f32 -1.442695, %v373_v25 }
 0x15d   :  { %1145 = vpow2.f32 %v1087_v28 }
 0x15e   :  { %v323_v32 = vpop.f32.mrf.mxu3 }
 0x15f   :  { %v353_v33 = vadd.f32 %v323_v32, %v310_v29 }
 0x160   :  { %v338_v34 = vpop.f32.mrf.mxu0 }
 0x161   :  { %v1086_v36 = vmul.f32 -1.442695, %v353_v33  ;;  %v351_v37 = vpop.f32.mrf.mxu1  ;;  %v404_v34 = vld [vmem:[#allocation3 + $0x30] sm:$0xff] }
 0x163   :  { %v1146_v38 = vpop.eup %1145  ;;  %1147 = vpow2.f32 %v1086_v36  ;;  %v405_v36 = vld [vmem:[#allocation3 + $0x38] sm:$0xff] }
 0x164   :  { %v377_v40 = vadd.f32 1.0, %v1146_v38 }
 0x166   :  { %v325_v43 = vpop.f32.mrf.mxu3  ;;  %1149 = vrcp.f32 %v377_v40  ;;  %v389_v14 = vand.u32 2147483648, %v377_v40  ;;  %vm383_vm13 = vweird.f32 %v377_v40  ;;  %v387_v16 = vand.u32 2147483647, %v377_v40 }
 0x168   :  { %v390_v23 = vor.u32 1.1754944e-38, %v389_v14  ;;  %vm388_vm15 = vcmp.eq.f32.partialorder %v387_v16, 8.507059e+37 }
 0x169   :  { %v1148_v45 = vpop.eup %1147 }
 0x16a   :  { %v357_v46 = vadd.f32 1.0, %v1148_v45 }
 0x16c   :  { %1151 = vrcp.f32 %v357_v46  ;;  %v1150_v47 = vpop.eup %1149  ;;  %v369_v56 = vand.u32 2147483648, %v357_v46  ;;  %v367_v60 = vand.u32 2147483647, %v357_v46  ;;  %vm363_vm9 = vweird.f32 %v357_v46 }
 0x16d   :  { %v379_v50 = vmul.f32 %v1150_v47, %v377_v40  ;;  %vm384_vm12 = vweird.f32 %v1150_v47 }
 0x16e   :  { %v370_v0 = vor.u32 1.1754944e-38, %v369_v56  ;;  %vm368_vm11 = vcmp.eq.f32.partialorder %v367_v60, 8.507059e+37  ;;  %vm385_vm14 = vmor %vm383_vm13, %vm384_vm12 }
 0x16f   :  { %v380_v54 = vsub.f32 1.0, %v379_v50 }
 0x171   :  { %v381_v61 = vmul.f32 %v1150_v47, %v380_v54 }
 0x172   :  { %v1152_v51 = vpop.eup %1151 }
 0x173   :  { %v359_v52 = vmul.f32 %v1152_v51, %v357_v46  ;;  %vm364_vm8 = vweird.f32 %v1152_v51  ;;  %v382_v13 = vadd.f32 %v1150_v47, %v381_v61 }
 0x174   :  { %vm365_vm10 = vmor %vm363_vm9, %vm364_vm8 }
 0x175   :  { %v360_v55 = vsub.f32 1.0, %v359_v52  ;;  %v386_v21 = vsel %vm385_vm14, %v1150_v47, %v382_v13 }
 0x176   :  { %v391_v24 = vsel %vm388_vm15, %v390_v23, %v386_v21 }
 0x177   :  { %v361_v59 = vmul.f32 %v1152_v51, %v360_v55  ;;  %v397_v25 = vsub.f32 1.0, %v391_v24  ;;  %v399_v29 = vmul.f32 %v391_v24, %v1472_v20  ;;  %v406_v24 = vld [vmem:[#allocation3 + $0x40] sm:$0xff] }
 0x179   :  { %v362_v63 = vadd.f32 %v1152_v51, %v361_v59 }
 0x17b   :  { %v366_v6 = vsel %vm365_vm10, %v1152_v51, %v362_v63 }
 0x17c   :  { %v371_v8 = vsel %vm368_vm11, %v370_v0, %v366_v6 }
 0x17d   :  { %v394_v15 = vmul.f32 %v393_v1, %v371_v8 }
 0x17f   :  { %v395_v17 = vadd.f32 %v394_v15, %v312_v12 }
 0x181   :  { %1153 = vtanh.f32 %v395_v17 }
 0x187   :  { %v1154_v28 = vpop.eup %1153 }
 0x188   :  { %v398_v27 = vmul.f32 %v1154_v28, %v397_v25 }
 0x18a   :  { %v1503_v32 = vadd.f32 %v399_v29, %v398_v27 }
 0x18c   :  { %402 = vst [vmem:[#allocation8 + $0x8] sm:$0xff] %v1503_v32  ;;  %v407_v33 = vpack.c.bf16 %v1503_v32, %v1503_v32 }
 0x18e   :  { %416 = vmatmul.bf16.vlgmr.msrb.gmra.mxu2 %v407_v33  ;;  %429 = vmatmul.bf16.vlgmr.msrb.gmra.mxu3 %v407_v33 }
 0x18f   :  { %442 = vmatmul.bf16.vlgmr.msra.gmra.mxu0 %v407_v33  ;;  %622 = vmatpush.bf16.msrb.mxu2 %v1341_v18 }
 0x190   :  { %690 = vmatpush.bf16.msrb.mxu3 %v1330_v3  ;;  %703 = vmatpush.bf16.msra.mxu0 %v1332_v7 }
 0x193   :  { %623 = vmatpush.bf16.msrb.mxu2 %v1351_v26 }
 0x194   :  { %691 = vmatpush.bf16.msrb.mxu3 %v1335_v10  ;;  %704 = vmatpush.bf16.msra.mxu0 %v1339_v11 }
 0x197   :  { %624 = vmatpush.bf16.msrb.mxu2 %v1361_v35 }
 0x198   :  { %692 = vmatpush.bf16.msrb.mxu3 %v1344_v19  ;;  %705 = vmatpush.bf16.msra.mxu0 %v1348_v22 }
 0x19b   :  { %625 = vmatpush.bf16.msrb.mxu2 %v1371_v44 }
 0x19c   :  { %693 = vmatpush.bf16.msrb.mxu3 %v1354_v30  ;;  %706 = vmatpush.bf16.msra.mxu0 %v1358_v31 }
 0x19f   :  { %626 = vmatpush.bf16.msrb.mxu2 %v1381_v53 }
 0x1a0   :  { %694 = vmatpush.bf16.msrb.mxu3 %v1364_v39  ;;  %707 = vmatpush.bf16.msra.mxu0 %v1368_v41 }
 0x1a3   :  { %627 = vmatpush.bf16.msrb.mxu2 %v1391_v62 }
 0x1a4   :  { %695 = vmatpush.bf16.msrb.mxu3 %v1374_v48  ;;  %708 = vmatpush.bf16.msra.mxu0 %v1378_v49 }
 0x1a7   :  { %628 = vmatpush.bf16.msrb.mxu2 %v1401_v5 }
 0x1a8   :  { %696 = vmatpush.bf16.msrb.mxu3 %v1384_v57  ;;  %709 = vmatpush.bf16.msra.mxu0 %v1388_v58 }
 0x1ab   :  { %629 = vmatpush.bf16.msrb.mxu2 %v1407_v9 }
 0x1ac   :  { %697 = vmatpush.bf16.msrb.mxu3 %v1394_v2  ;;  %710 = vmatpush.bf16.msra.mxu0 %v1398_v4 }
 0x20c   :  { %v443_v20 = vpop.f32.mrf.mxu0 }
 0x20d   :  { %v487_v16 = vadd.f32 %v1469_v42, %v443_v20 }
 0x211   :  { %v417_v37 = vpop.f32.mrf.mxu2  ;;  %v430_v38 = vpop.f32.mrf.mxu3 }
 0x212   :  { %v447_v40 = vadd.f32 %v417_v37, %v404_v34  ;;  %v467_v43 = vadd.f32 %v430_v38, %v405_v36 }
 0x214   :  { %v1088_v45 = vmul.f32 -1.442695, %v447_v40  ;;  %v1089_v46 = vmul.f32 -1.442695, %v467_v43  ;;  %v445_v47 = vpop.f32.mrf.mxu0 }
 0x216   :  { %1155 = vpow2.f32 %v1088_v45 }
 0x217   :  { %1157 = vpow2.f32 %v1089_v46 }
 0x219   :  { %v419_v50 = vpop.f32.mrf.mxu2  ;;  %v432_v51 = vpop.f32.mrf.mxu3 }
 0x21a   :  { %v499_v51 = vld [vmem:[#allocation3 + $0x50] sm:$0xff] }
 0x21c   :  { %v1156_v52 = vpop.eup %1155 }
 0x21d   :  { %v1158_v54 = vpop.eup %1157  ;;  %v451_v55 = vadd.f32 1.0, %v1156_v52 }
 0x21e   :  { %v471_v56 = vadd.f32 1.0, %v1158_v54 }
 0x21f   :  { %1159 = vrcp.f32 %v451_v55  ;;  %v463_v1 = vand.u32 2147483648, %v451_v55  ;;  %v461_v12 = vand.u32 2147483647, %v451_v55  ;;  %vm457_vm1 = vweird.f32 %v451_v55 }
 0x220   :  { %1161 = vrcp.f32 %v471_v56  ;;  %v483_v28 = vand.u32 2147483648, %v471_v56  ;;  %vm477_vm5 = vweird.f32 %v471_v56  ;;  %v481_v27 = vand.u32 2147483647, %v471_v56 }
 0x221   :  { %v464_v15 = vor.u32 1.1754944e-38, %v463_v1  ;;  %vm462_vm3 = vcmp.eq.f32.partialorder %v461_v12, 8.507059e+37 }
 0x222   :  { %v484_v34 = vor.u32 1.1754944e-38, %v483_v28  ;;  %vm482_vm7 = vcmp.eq.f32.partialorder %v481_v27, 8.507059e+37 }
 0x225   :  { %v1160_v59 = vpop.eup %1159 }
 0x226   :  { %v1162_v60 = vpop.eup %1161  ;;  %v453_v61 = vmul.f32 %v1160_v59, %v451_v55  ;;  %vm458_vm0 = vweird.f32 %v1160_v59 }
 0x227   :  { %v473_v63 = vmul.f32 %v1162_v60, %v471_v56  ;;  %vm459_vm2 = vmor %vm457_vm1, %vm458_vm0  ;;  %vm478_vm4 = vweird.f32 %v1162_v60 }
 0x228   :  { %v454_v0 = vsub.f32 1.0, %v453_v61  ;;  %vm479_vm6 = vmor %vm477_vm5, %vm478_vm4 }
 0x229   :  { %v474_v6 = vsub.f32 1.0, %v473_v63 }
 0x22a   :  { %v455_v8 = vmul.f32 %v1160_v59, %v454_v0 }
 0x22b   :  { %v475_v13 = vmul.f32 %v1162_v60, %v474_v6 }
 0x22c   :  { %v456_v14 = vadd.f32 %v1160_v59, %v455_v8 }
 0x22d   :  { %v476_v23 = vadd.f32 %v1162_v60, %v475_v13 }
 0x22e   :  { %v460_v17 = vsel %vm459_vm2, %v1160_v59, %v456_v14 }
 0x22f   :  { %v465_v21 = vsel %vm462_vm3, %v464_v15, %v460_v17  ;;  %v480_v33 = vsel %vm479_vm6, %v1162_v60, %v476_v23 }
 0x230   :  { %v488_v25 = vmul.f32 %v487_v16, %v465_v21  ;;  %v485_v36 = vsel %vm482_vm7, %v484_v34, %v480_v33 }
 0x231   :  { %v491_v37 = vsub.f32 1.0, %v485_v36  ;;  %v493_v40 = vmul.f32 %v485_v36, %v1503_v32  ;;  %v498_v32 = vld [vmem:[#allocation3 + $0x48] sm:$0xff] }
 0x232   :  { %v489_v29 = vadd.f32 %v488_v25, %v406_v24 }
 0x234   :  { %1163 = vtanh.f32 %v489_v29  ;;  %v500_v29 = vld [vmem:[#allocation3 + $0x58] sm:$0xff] }
 0x23a   :  { %v1164_v38 = vpop.eup %1163 }
 0x23b   :  { %v492_v20 = vmul.f32 %v1164_v38, %v491_v37 }
 0x23d   :  { %v1534_v43 = vadd.f32 %v493_v40, %v492_v20 }
 0x23f   :  { %496 = vst [vmem:[#allocation8 + $0x10] sm:$0xff] %v1534_v43  ;;  %v501_v45 = vpack.c.bf16 %v1534_v43, %v1534_v43 }
 0x241   :  { %510 = vmatmul.bf16.vlgmr.msra.gmra.mxu1 %v501_v45  ;;  %523 = vmatmul.bf16.vlgmr.msra.gmra.mxu2 %v501_v45 }
 0x242   :  { %536 = vmatmul.bf16.vlgmr.msra.gmra.mxu3 %v501_v45  ;;  %716 = vmatpush.bf16.msra.mxu1 %v1341_v18 }
 0x243   :  { %784 = vmatpush.bf16.msra.mxu2 %v1330_v3  ;;  %797 = vmatpush.bf16.msra.mxu3 %v1332_v7 }
 0x246   :  { %717 = vmatpush.bf16.msra.mxu1 %v1351_v26 }
 0x247   :  { %785 = vmatpush.bf16.msra.mxu2 %v1335_v10  ;;  %798 = vmatpush.bf16.msra.mxu3 %v1339_v11 }
 0x24a   :  { %718 = vmatpush.bf16.msra.mxu1 %v1361_v35 }
 0x24b   :  { %786 = vmatpush.bf16.msra.mxu2 %v1344_v19  ;;  %799 = vmatpush.bf16.msra.mxu3 %v1348_v22 }
 0x24e   :  { %719 = vmatpush.bf16.msra.mxu1 %v1371_v44 }
 0x24f   :  { %787 = vmatpush.bf16.msra.mxu2 %v1354_v30  ;;  %800 = vmatpush.bf16.msra.mxu3 %v1358_v31 }
 0x252   :  { %720 = vmatpush.bf16.msra.mxu1 %v1381_v53 }
 0x253   :  { %788 = vmatpush.bf16.msra.mxu2 %v1364_v39  ;;  %801 = vmatpush.bf16.msra.mxu3 %v1368_v41 }
 0x256   :  { %721 = vmatpush.bf16.msra.mxu1 %v1391_v62 }
 0x257   :  { %789 = vmatpush.bf16.msra.mxu2 %v1374_v48  ;;  %802 = vmatpush.bf16.msra.mxu3 %v1378_v49 }
 0x25a   :  { %722 = vmatpush.bf16.msra.mxu1 %v1401_v5 }
 0x25b   :  { %790 = vmatpush.bf16.msra.mxu2 %v1384_v57  ;;  %803 = vmatpush.bf16.msra.mxu3 %v1388_v58 }
 0x25e   :  { %723 = vmatpush.bf16.msra.mxu1 %v1407_v9 }
 0x25f   :  { %791 = vmatpush.bf16.msra.mxu2 %v1394_v2  ;;  %804 = vmatpush.bf16.msra.mxu3 %v1398_v4 }
 0x2be   :  { %v511_v46 = vpop.f32.mrf.mxu1 }
 0x2bf   :  { %v541_v47 = vadd.f32 %v511_v46, %v498_v32 }
 0x2c1   :  { %v1090_v50 = vmul.f32 -1.442695, %v541_v47 }
 0x2c3   :  { %1165 = vpow2.f32 %v1090_v50 }
 0x2c4   :  { %v524_v52 = vpop.f32.mrf.mxu2 }
 0x2c5   :  { %v561_v54 = vadd.f32 %v524_v52, %v499_v51  ;;  %v537_v55 = vpop.f32.mrf.mxu3 }
 0x2c6   :  { %v513_v56 = vpop.f32.mrf.mxu1  ;;  %v581_v27 = vadd.f32 %v1469_v42, %v537_v55 }
 0x2c7   :  { %v1091_v59 = vmul.f32 -1.442695, %v561_v54 }
 0x2c9   :  { %v1166_v60 = vpop.eup %1165  ;;  %1167 = vpow2.f32 %v1091_v59 }
 0x2ca   :  { %v545_v61 = vadd.f32 1.0, %v1166_v60 }
 0x2cc   :  { %1169 = vrcp.f32 %v545_v61  ;;  %v526_v63 = vpop.f32.mrf.mxu2  ;;  %v557_v14 = vand.u32 2147483648, %v545_v61  ;;  %v555_v16 = vand.u32 2147483647, %v545_v61  ;;  %vm551_vm9 = vweird.f32 %v545_v61 }
 0x2cd   :  { %v539_v0 = vpop.f32.mrf.mxu3 }
 0x2ce   :  { %v558_v24 = vor.u32 1.1754944e-38, %v557_v14  ;;  %vm556_vm11 = vcmp.eq.f32.partialorder %v555_v16, 8.507059e+37 }
 0x2cf   :  { %v1168_v1 = vpop.eup %1167 }
 0x2d0   :  { %v565_v6 = vadd.f32 1.0, %v1168_v1 }
 0x2d2   :  { %v1170_v8 = vpop.eup %1169  ;;  %1171 = vrcp.f32 %v565_v6  ;;  %v577_v36 = vand.u32 2147483648, %v565_v6  ;;  %v575_v38 = vand.u32 2147483647, %v565_v6  ;;  %vm571_vm13 = vweird.f32 %v565_v6 }
 0x2d3   :  { %v547_v12 = vmul.f32 %v1170_v8, %v545_v61  ;;  %vm552_vm8 = vweird.f32 %v1170_v8 }
 0x2d4   :  { %vm553_vm10 = vmor %vm551_vm9, %vm552_vm8  ;;  %v578_v45 = vor.u32 1.1754944e-38, %v577_v36  ;;  %vm576_vm15 = vcmp.eq.f32.partialorder %v575_v38, 8.507059e+37 }
 0x2d5   :  { %v548_v13 = vsub.f32 1.0, %v547_v12 }
 0x2d7   :  { %v549_v15 = vmul.f32 %v1170_v8, %v548_v13 }
 0x2d8   :  { %v1172_v17 = vpop.eup %1171 }
 0x2d9   :  { %v567_v21 = vmul.f32 %v1172_v17, %v565_v6  ;;  %v550_v23 = vadd.f32 %v1170_v8, %v549_v15  ;;  %vm572_vm12 = vweird.f32 %v1172_v17 }
 0x2da   :  { %vm573_vm14 = vmor %vm571_vm13, %vm572_vm12 }
 0x2db   :  { %v568_v25 = vsub.f32 1.0, %v567_v21  ;;  %v554_v28 = vsel %vm553_vm10, %v1170_v8, %v550_v23 }
 0x2dc   :  { %v559_v33 = vsel %vm556_vm11, %v558_v24, %v554_v28 }
 0x2dd   :  { %v569_v34 = vmul.f32 %v1172_v17, %v568_v25  ;;  %v582_v37 = vmul.f32 %v581_v27, %v559_v33 }
 0x2df   :  { %v570_v20 = vadd.f32 %v1172_v17, %v569_v34  ;;  %v583_v40 = vadd.f32 %v582_v37, %v500_v29 }
 0x2e1   :  { %v574_v32 = vsel %vm573_vm14, %v1172_v17, %v570_v20  ;;  %1173 = vtanh.f32 %v583_v40  ;;  %v594_v17 = vld [vmem:[#allocation3 + $0x70] sm:$0xff] }
 0x2e2   :  { %v579_v46 = vsel %vm576_vm15, %v578_v45, %v574_v32  ;;  %v687_v45 = vld [vmem:[#allocation3 + $0x80] sm:$0xff] }
 0x2e3   :  { %v585_v47 = vsub.f32 1.0, %v579_v46  ;;  %v587_v52 = vmul.f32 %v579_v46, %v1534_v43 }
 0x2e7   :  { %v1174_v50 = vpop.eup %1173 }
 0x2e8   :  { %v586_v51 = vmul.f32 %v1174_v50, %v585_v47 }
 0x2ea   :  { %v1565_v54 = vadd.f32 %v587_v52, %v586_v51 }
 0x2ec   :  { %590 = vst [vmem:[#allocation8 + $0x18] sm:$0xff] %v1565_v54  ;;  %v595_v55 = vpack.c.bf16 %v1565_v54, %v1565_v54 }
 0x2ee   :  { %604 = vmatmul.bf16.vlgmr.msrb.gmra.mxu0 %v595_v55  ;;  %617 = vmatmul.bf16.vlgmr.msrb.gmra.mxu1 %v595_v55 }
 0x2ef   :  { %630 = vmatmul.bf16.vlgmr.msrb.gmra.mxu2 %v595_v55  ;;  %810 = vmatpush.bf16.msrb.mxu0 %v1341_v18 }
 0x2f0   :  { %878 = vmatpush.bf16.msrb.mxu1 %v1330_v3  ;;  %891 = vmatpush.bf16.msrb.mxu2 %v1332_v7  ;;  %v592_v3 = vld [vmem:[#allocation3 + $0x60] sm:$0xff]  ;;  %v593_v7 = vld [vmem:[#allocation3 + $0x68] sm:$0xff] }
 0x2f3   :  { %811 = vmatpush.bf16.msrb.mxu0 %v1351_v26 }
 0x2f4   :  { %879 = vmatpush.bf16.msrb.mxu1 %v1335_v10  ;;  %892 = vmatpush.bf16.msrb.mxu2 %v1339_v11 }
 0x2f7   :  { %812 = vmatpush.bf16.msrb.mxu0 %v1361_v35 }
 0x2f8   :  { %880 = vmatpush.bf16.msrb.mxu1 %v1344_v19  ;;  %893 = vmatpush.bf16.msrb.mxu2 %v1348_v22 }
 0x2fb   :  { %813 = vmatpush.bf16.msrb.mxu0 %v1371_v44 }
 0x2fc   :  { %881 = vmatpush.bf16.msrb.mxu1 %v1354_v30  ;;  %894 = vmatpush.bf16.msrb.mxu2 %v1358_v31 }
 0x2ff   :  { %814 = vmatpush.bf16.msrb.mxu0 %v1381_v53 }
 0x300   :  { %882 = vmatpush.bf16.msrb.mxu1 %v1364_v39  ;;  %895 = vmatpush.bf16.msrb.mxu2 %v1368_v41 }
 0x303   :  { %815 = vmatpush.bf16.msrb.mxu0 %v1391_v62 }
 0x304   :  { %883 = vmatpush.bf16.msrb.mxu1 %v1374_v48  ;;  %896 = vmatpush.bf16.msrb.mxu2 %v1378_v49 }
 0x307   :  { %816 = vmatpush.bf16.msrb.mxu0 %v1401_v5 }
 0x308   :  { %884 = vmatpush.bf16.msrb.mxu1 %v1384_v57  ;;  %897 = vmatpush.bf16.msrb.mxu2 %v1388_v58 }
 0x30b   :  { %817 = vmatpush.bf16.msrb.mxu0 %v1407_v9 }
 0x30c   :  { %885 = vmatpush.bf16.msrb.mxu1 %v1394_v2  ;;  %898 = vmatpush.bf16.msrb.mxu2 %v1398_v4 }
 0x36b   :  { %v605_v10 = vpop.f32.mrf.mxu0  ;;  %v618_v11 = vpop.f32.mrf.mxu1 }
 0x36c   :  { %v635_v19 = vadd.f32 %v605_v10, %v592_v3  ;;  %v655_v22 = vadd.f32 %v618_v11, %v593_v7 }
 0x36e   :  { %v1092_v30 = vmul.f32 -1.442695, %v635_v19  ;;  %v1093_v31 = vmul.f32 -1.442695, %v655_v22 }
 0x370   :  { %1175 = vpow2.f32 %v1092_v30 }
 0x371   :  { %1177 = vpow2.f32 %v1093_v31 }
 0x372   :  { %v631_v39 = vpop.f32.mrf.mxu2 }
 0x373   :  { %v607_v41 = vpop.f32.mrf.mxu0  ;;  %v620_v48 = vpop.f32.mrf.mxu1  ;;  %v675_v15 = vadd.f32 %v1469_v42, %v631_v39 }
 0x376   :  { %v1176_v49 = vpop.eup %1175 }
 0x377   :  { %v1178_v57 = vpop.eup %1177  ;;  %v639_v58 = vadd.f32 1.0, %v1176_v49 }
 0x378   :  { %v659_v43 = vadd.f32 1.0, %v1178_v57 }
 0x379   :  { %1179 = vrcp.f32 %v639_v58  ;;  %v651_v0 = vand.u32 2147483648, %v639_v58  ;;  %v649_v6 = vand.u32 2147483647, %v639_v58  ;;  %vm645_vm1 = vweird.f32 %v639_v58 }
 0x37a   :  { %1181 = vrcp.f32 %v659_v43  ;;  %v633_v2 = vpop.f32.mrf.mxu2  ;;  %v671_v23 = vand.u32 2147483648, %v659_v43  ;;  %vm665_vm5 = vweird.f32 %v659_v43  ;;  %v669_v25 = vand.u32 2147483647, %v659_v43 }
 0x37b   :  { %v652_v13 = vor.u32 1.1754944e-38, %v651_v0  ;;  %vm650_vm3 = vcmp.eq.f32.partialorder %v649_v6, 8.507059e+37  ;;  %v688_v2 = vld [vmem:[#allocation3 + $0x88] sm:$0xff] }
 0x37c   :  { %v672_v29 = vor.u32 1.1754944e-38, %v671_v23  ;;  %vm670_vm7 = vcmp.eq.f32.partialorder %v669_v25, 8.507059e+37 }
 0x37f   :  { %v1180_v4 = vpop.eup %1179 }
 0x380   :  { %v1182_v56 = vpop.eup %1181  ;;  %v641_v59 = vmul.f32 %v1180_v4, %v639_v58  ;;  %vm646_vm0 = vweird.f32 %v1180_v4 }
 0x381   :  { %v661_v60 = vmul.f32 %v1182_v56, %v659_v43  ;;  %vm647_vm2 = vmor %vm645_vm1, %vm646_vm0  ;;  %vm666_vm4 = vweird.f32 %v1182_v56 }
 0x382   :  { %v642_v61 = vsub.f32 1.0, %v641_v59  ;;  %vm667_vm6 = vmor %vm665_vm5, %vm666_vm4 }
 0x383   :  { %v662_v63 = vsub.f32 1.0, %v661_v60 }
 0x384   :  { %v643_v1 = vmul.f32 %v1180_v4, %v642_v61 }
 0x385   :  { %v663_v8 = vmul.f32 %v1182_v56, %v662_v63 }
 0x386   :  { %v644_v12 = vadd.f32 %v1180_v4, %v643_v1 }
 0x387   :  { %v664_v16 = vadd.f32 %v1182_v56, %v663_v8 }
 0x388   :  { %v648_v14 = vsel %vm647_vm2, %v1180_v4, %v644_v12 }
 0x389   :  { %v653_v21 = vsel %vm650_vm3, %v652_v13, %v648_v14  ;;  %v668_v27 = vsel %vm667_vm6, %v1182_v56, %v664_v16  ;;  %v780_v16 = vld [vmem:[#allocation3 + $0x90] sm:$0xff] }
 0x38a   :  { %v676_v24 = vmul.f32 %v675_v15, %v653_v21  ;;  %v673_v33 = vsel %vm670_vm7, %v672_v29, %v668_v27 }
 0x38b   :  { %v679_v34 = vsub.f32 1.0, %v673_v33  ;;  %v681_v38 = vmul.f32 %v673_v33, %v1565_v54 }
 0x38c   :  { %v677_v28 = vadd.f32 %v676_v24, %v594_v17  ;;  %v781_v17 = vld [vmem:[#allocation3 + $0x98] sm:$0xff] }
 0x38e   :  { %1183 = vtanh.f32 %v677_v28 }
 0x394   :  { %v1184_v36 = vpop.eup %1183 }
 0x395   :  { %v680_v37 = vmul.f32 %v1184_v36, %v679_v34 }
 0x397   :  { %v1596_v20 = vadd.f32 %v681_v38, %v680_v37 }
 0x399   :  { %684 = vst [vmem:[#allocation8 + $0x20] sm:$0xff] %v1596_v20  ;;  %v689_v40 = vpack.c.bf16 %v1596_v20, %v1596_v20 }
 0x39b   :  { %698 = vmatmul.bf16.vlgmr.msrb.gmra.mxu3 %v689_v40  ;;  %711 = vmatmul.bf16.vlgmr.msra.gmra.mxu0 %v689_v40 }
 0x39c   :  { %724 = vmatmul.bf16.vlgmr.msra.gmra.mxu1 %v689_v40  ;;  %904 = vmatpush.bf16.msrb.mxu3 %v1341_v18  ;;  %v686_v18 = vld [vmem:[#allocation3 + $0x78] sm:$0xff] }
 0x3a0   :  { %905 = vmatpush.bf16.msrb.mxu3 %v1351_v26 }
 0x3a4   :  { %906 = vmatpush.bf16.msrb.mxu3 %v1361_v35 }
 0x3a8   :  { %907 = vmatpush.bf16.msrb.mxu3 %v1371_v44 }
 0x3ac   :  { %908 = vmatpush.bf16.msrb.mxu3 %v1381_v53 }
 0x3b0   :  { %909 = vmatpush.bf16.msrb.mxu3 %v1391_v62 }
 0x3b4   :  { %910 = vmatpush.bf16.msrb.mxu3 %v1401_v5 }
 0x3b8   :  { %911 = vmatpush.bf16.msrb.mxu3 %v1407_v9 }
 0x418   :  { %v712_v32 = vpop.f32.mrf.mxu0 }
 0x419   :  { %v749_v46 = vadd.f32 %v712_v32, %v687_v45  ;;  %v725_v47 = vpop.f32.mrf.mxu1 }
 0x41a   :  { %v769_v49 = vadd.f32 %v1469_v42, %v725_v47 }
 0x41b   :  { %v1095_v50 = vmul.f32 -1.442695, %v749_v46 }
 0x41d   :  { %1185 = vpow2.f32 %v1095_v50 }
 0x41e   :  { %v699_v26 = vpop.f32.mrf.mxu3 }
 0x41f   :  { %v729_v51 = vadd.f32 %v699_v26, %v686_v18 }
 0x420   :  { %v714_v35 = vpop.f32.mrf.mxu0 }
 0x421   :  { %v1094_v52 = vmul.f32 -1.442695, %v729_v51  ;;  %v727_v44 = vpop.f32.mrf.mxu1 }
 0x423   :  { %v1186_v54 = vpop.eup %1185  ;;  %1187 = vpow2.f32 %v1094_v52 }
 0x424   :  { %v753_v53 = vadd.f32 1.0, %v1186_v54 }
 0x426   :  { %v701_v62 = vpop.f32.mrf.mxu3  ;;  %1189 = vrcp.f32 %v753_v53  ;;  %v765_v4 = vand.u32 2147483648, %v753_v53  ;;  %vm759_vm13 = vweird.f32 %v753_v53  ;;  %v763_v59 = vand.u32 2147483647, %v753_v53 }
 0x428   :  { %v766_v63 = vor.u32 1.1754944e-38, %v765_v4  ;;  %vm764_vm15 = vcmp.eq.f32.partialorder %v763_v59, 8.507059e+37 }
 0x429   :  { %v1188_v5 = vpop.eup %1187 }
 0x42a   :  { %v733_v55 = vadd.f32 1.0, %v1188_v5 }
 0x42c   :  { %1191 = vrcp.f32 %v733_v55  ;;  %v1190_v9 = vpop.eup %1189  ;;  %v745_v22 = vand.u32 2147483648, %v733_v55  ;;  %v743_v31 = vand.u32 2147483647, %v733_v55  ;;  %vm739_vm9 = vweird.f32 %v733_v55 }
 0x42d   :  { %v755_v3 = vmul.f32 %v1190_v9, %v753_v53  ;;  %vm760_vm12 = vweird.f32 %v1190_v9 }
 0x42e   :  { %v746_v48 = vor.u32 1.1754944e-38, %v745_v22  ;;  %vm744_vm11 = vcmp.eq.f32.partialorder %v743_v31, 8.507059e+37  ;;  %vm761_vm14 = vmor %vm759_vm13, %vm760_vm12 }
 0x42f   :  { %v756_v11 = vsub.f32 1.0, %v755_v3 }
 0x431   :  { %v757_v39 = vmul.f32 %v1190_v9, %v756_v11 }
 0x432   :  { %v1192_v7 = vpop.eup %1191 }
 0x433   :  { %v735_v10 = vmul.f32 %v1192_v7, %v733_v55  ;;  %vm740_vm8 = vweird.f32 %v1192_v7  ;;  %v758_v58 = vadd.f32 %v1190_v9, %v757_v39  ;;  %v782_v55 = vld [vmem:[#allocation3 + $0xa0] sm:$0xff] }
 0x434   :  { %vm741_vm10 = vmor %vm739_vm9, %vm740_vm8 }
 0x435   :  { %v736_v19 = vsub.f32 1.0, %v735_v10  ;;  %v762_v61 = vsel %vm761_vm14, %v1190_v9, %v758_v58 }
 0x436   :  { %v767_v0 = vsel %vm764_vm15, %v766_v63, %v762_v61 }
 0x437   :  { %v737_v30 = vmul.f32 %v1192_v7, %v736_v19  ;;  %v773_v1 = vsub.f32 1.0, %v767_v0  ;;  %v775_v12 = vmul.f32 %v767_v0, %v1596_v20 }
 0x439   :  { %v738_v41 = vadd.f32 %v1192_v7, %v737_v30 }
 0x43b   :  { %v742_v57 = vsel %vm741_vm10, %v1192_v7, %v738_v41 }
 0x43c   :  { %v747_v43 = vsel %vm744_vm11, %v746_v48, %v742_v57 }
 0x43d   :  { %v770_v56 = vmul.f32 %v769_v49, %v747_v43  ;;  %v874_v49 = vld [vmem:[#allocation3 + $0xa8] sm:$0xff] }
 0x43f   :  { %v771_v60 = vadd.f32 %v770_v56, %v688_v2  ;;  %v875_v2 = vld [vmem:[#allocation3 + $0xb0] sm:$0xff] }
 0x441   :  { %1193 = vtanh.f32 %v771_v60 }
 0x447   :  { %v1194_v6 = vpop.eup %1193 }
 0x448   :  { %v774_v8 = vmul.f32 %v1194_v6, %v773_v1 }
 0x44a   :  { %v776_v13 = vadd.f32 %v775_v12, %v774_v8 }
 0x44c   :  { %778 = vst [vmem:[#allocation8 + $0x28] sm:$0xff] %v776_v13  ;;  %v783_v14 = vpack.c.bf16 %v776_v13, %v776_v13 }
 0x44e   :  { %792 = vmatmul.bf16.vlgmr.msra.gmra.mxu2 %v783_v14  ;;  %805 = vmatmul.bf16.vlgmr.msra.gmra.mxu3 %v783_v14 }
 0x44f   :  { %818 = vmatmul.bf16.vlgmr.msrb.gmra.mxu0 %v783_v14 }
 0x4cc   :  { %v819_v15 = vpop.f32.mrf.mxu0 }
 0x4cd   :  { %v863_v54 = vadd.f32 %v1469_v42, %v819_v15 }
 0x4d1   :  { %v793_v21 = vpop.f32.mrf.mxu2  ;;  %v806_v23 = vpop.f32.mrf.mxu3 }
 0x4d2   :  { %v823_v24 = vadd.f32 %v793_v21, %v780_v16  ;;  %v843_v25 = vadd.f32 %v806_v23, %v781_v17 }
 0x4d4   :  { %v1096_v28 = vmul.f32 -1.442695, %v823_v24  ;;  %v1097_v27 = vmul.f32 -1.442695, %v843_v25  ;;  %v821_v29 = vpop.f32.mrf.mxu0 }
 0x4d6   :  { %1195 = vpow2.f32 %v1096_v28 }
 0x4d7   :  { %1197 = vpow2.f32 %v1097_v27 }
 0x4d9   :  { %v795_v33 = vpop.f32.mrf.mxu2  ;;  %v808_v34 = vpop.f32.mrf.mxu3 }
 0x4da   :  { %v1215_v33 = vld [vmem:[%s1626_s2] ss:$0 sm:$0xff]  ;;  %s972_s2 = sshll.u32 %s1301_s28, 4  ;;  %s973_s2 = int_to_ptr.vmem [resolvable:$true] %s972_s2 }
 0x4dc   :  { %v1196_v36 = vpop.eup %1195 }
 0x4dd   :  { %v1198_v37 = vpop.eup %1197  ;;  %v827_v38 = vadd.f32 1.0, %v1196_v36  ;;  %v876_v36 = vld [vmem:[#allocation3 + $0xb8] sm:$0xff] }
 0x4de   :  { %v847_v20 = vadd.f32 1.0, %v1198_v37 }
 0x4df   :  { %1199 = vrcp.f32 %v827_v38  ;;  %v839_v50 = vand.u32 2147483648, %v827_v38  ;;  %v837_v51 = vand.u32 2147483647, %v827_v38  ;;  %vm833_vm1 = vweird.f32 %v827_v38 }
 0x4e0   :  { %1201 = vrcp.f32 %v847_v20  ;;  %v859_v3 = vand.u32 2147483648, %v847_v20  ;;  %vm853_vm5 = vweird.f32 %v847_v20  ;;  %v857_v7 = vand.u32 2147483647, %v847_v20 }
 0x4e1   :  { %v840_v44 = vor.u32 1.1754944e-38, %v839_v50  ;;  %vm838_vm3 = vcmp.eq.f32.partialorder %v837_v51, 8.507059e+37 }
 0x4e2   :  { %v860_v19 = vor.u32 1.1754944e-38, %v859_v3  ;;  %vm858_vm7 = vcmp.eq.f32.partialorder %v857_v7, 8.507059e+37 }
 0x4e5   :  { %v1200_v40 = vpop.eup %1199 }
 0x4e6   :  { %v1202_v45 = vpop.eup %1201  ;;  %v829_v32 = vmul.f32 %v1200_v40, %v827_v38  ;;  %vm834_vm0 = vweird.f32 %v1200_v40 }
 0x4e7   :  { %v849_v46 = vmul.f32 %v1202_v45, %v847_v20  ;;  %vm835_vm2 = vmor %vm833_vm1, %vm834_vm0  ;;  %vm854_vm4 = vweird.f32 %v1202_v45 }
 0x4e8   :  { %v830_v47 = vsub.f32 1.0, %v829_v32  ;;  %vm855_vm6 = vmor %vm853_vm5, %vm854_vm4 }
 0x4e9   :  { %v850_v18 = vsub.f32 1.0, %v849_v46 }
 0x4ea   :  { %v831_v26 = vmul.f32 %v1200_v40, %v830_v47 }
 0x4eb   :  { %v851_v35 = vmul.f32 %v1202_v45, %v850_v18 }
 0x4ec   :  { %v832_v52 = vadd.f32 %v1200_v40, %v831_v26 }
 0x4ed   :  { %v852_v5 = vadd.f32 %v1202_v45, %v851_v35 }
 0x4ee   :  { %v836_v53 = vsel %vm835_vm2, %v1200_v40, %v832_v52 }
 0x4ef   :  { %v841_v62 = vsel %vm838_vm3, %v840_v44, %v836_v53  ;;  %v856_v11 = vsel %vm855_vm6, %v1202_v45, %v852_v5 }
 0x4f0   :  { %v864_v9 = vmul.f32 %v863_v54, %v841_v62  ;;  %v861_v22 = vsel %vm858_vm7, %v860_v19, %v856_v11 }
 0x4f1   :  { %v867_v30 = vsub.f32 1.0, %v861_v22  ;;  %v869_v39 = vmul.f32 %v861_v22, %v776_v13 }
 0x4f2   :  { %v865_v10 = vadd.f32 %v864_v9, %v782_v55 }
 0x4f4   :  { %1203 = vtanh.f32 %v865_v10 }
 0x4fa   :  { %v1204_v31 = vpop.eup %1203 }
 0x4fb   :  { %v868_v42 = vmul.f32 %v1204_v31, %v867_v30 }
 0x4fd   :  { %v1612_v41 = vadd.f32 %v869_v39, %v868_v42 }
 0x4ff   :  { %872 = vst [vmem:[#allocation8 + $0x30] sm:$0xff] %v1612_v41  ;;  %v877_v48 = vpack.c.bf16 %v1612_v41, %v1612_v41 }
 0x501   :  { %886 = vmatmul.bf16.vlgmr.msrb.gmra.mxu1 %v877_v48  ;;  %899 = vmatmul.bf16.vlgmr.msrb.gmra.mxu2 %v877_v48 }
 0x502   :  { %912 = vmatmul.bf16.vlgmr.msrb.gmra.mxu3 %v877_v48 }
 0x57e   :  { %v887_v57 = vpop.f32.mrf.mxu1 }
 0x57f   :  { %v917_v58 = vadd.f32 %v887_v57, %v874_v49 }
 0x581   :  { %v1098_v43 = vmul.f32 -1.442695, %v917_v58 }
 0x583   :  { %1205 = vpow2.f32 %v1098_v43 }
 0x584   :  { %v900_v4 = vpop.f32.mrf.mxu2 }
 0x585   :  { %v937_v56 = vadd.f32 %v900_v4, %v875_v2  ;;  %v913_v59 = vpop.f32.mrf.mxu3 }
 0x586   :  { %v889_v60 = vpop.f32.mrf.mxu1  ;;  %v957_v34 = vadd.f32 %v1215_v33, %v913_v59 }
 0x587   :  { %v1099_v61 = vmul.f32 -1.442695, %v937_v56 }
 0x589   :  { %v1206_v63 = vpop.eup %1205  ;;  %1207 = vpow2.f32 %v1099_v61 }
 0x58a   :  { %v921_v0 = vadd.f32 1.0, %v1206_v63 }
 0x58c   :  { %1209 = vrcp.f32 %v921_v0  ;;  %v902_v1 = vpop.f32.mrf.mxu2  ;;  %v933_v16 = vand.u32 2147483648, %v921_v0  ;;  %v931_v21 = vand.u32 2147483647, %v921_v0  ;;  %vm927_vm9 = vweird.f32 %v921_v0 }
 0x58d   :  { %v915_v6 = vpop.f32.mrf.mxu3 }
 0x58e   :  { %v934_v28 = vor.u32 1.1754944e-38, %v933_v16  ;;  %vm932_vm11 = vcmp.eq.f32.partialorder %v931_v21, 8.507059e+37 }
 0x58f   :  { %v1208_v8 = vpop.eup %1207 }
 0x590   :  { %v941_v12 = vadd.f32 1.0, %v1208_v8 }
 0x592   :  { %v1210_v13 = vpop.eup %1209  ;;  %1211 = vrcp.f32 %v941_v12  ;;  %v953_v20 = vand.u32 2147483648, %v941_v12  ;;  %v951_v45 = vand.u32 2147483647, %v941_v12  ;;  %vm947_vm13 = vweird.f32 %v941_v12 }
 0x593   :  { %v923_v14 = vmul.f32 %v1210_v13, %v921_v0  ;;  %vm928_vm8 = vweird.f32 %v1210_v13 }
 0x594   :  { %vm929_vm10 = vmor %vm927_vm9, %vm928_vm8  ;;  %v954_v47 = vor.u32 1.1754944e-38, %v953_v20  ;;  %vm952_vm15 = vcmp.eq.f32.partialorder %v951_v45, 8.507059e+37 }
 0x595   :  { %v924_v15 = vsub.f32 1.0, %v923_v14 }
 0x597   :  { %v925_v17 = vmul.f32 %v1210_v13, %v924_v15 }
 0x598   :  { %v1212_v23 = vpop.eup %1211 }
 0x599   :  { %v943_v24 = vmul.f32 %v1212_v23, %v941_v12  ;;  %v926_v25 = vadd.f32 %v1210_v13, %v925_v17  ;;  %vm948_vm12 = vweird.f32 %v1212_v23 }
 0x59a   :  { %vm949_vm14 = vmor %vm947_vm13, %vm948_vm12 }
 0x59b   :  { %v944_v27 = vsub.f32 1.0, %v943_v24  ;;  %v930_v29 = vsel %vm929_vm10, %v1210_v13, %v926_v25 }
 0x59c   :  { %v935_v37 = vsel %vm932_vm11, %v934_v28, %v930_v29 }
 0x59d   :  { %v945_v38 = vmul.f32 %v1212_v23, %v944_v27  ;;  %v958_v40 = vmul.f32 %v957_v34, %v935_v37 }
 0x59f   :  { %v946_v32 = vadd.f32 %v1212_v23, %v945_v38  ;;  %v959_v46 = vadd.f32 %v958_v40, %v876_v36 }
 0x5a1   :  { %v950_v50 = vsel %vm949_vm14, %v1212_v23, %v946_v32  ;;  %1213 = vtanh.f32 %v959_v46 }
 0x5a2   :  { %v955_v18 = vsel %vm952_vm15, %v954_v47, %v950_v50 }
 0x5a3   :  { %v961_v26 = vsub.f32 1.0, %v955_v18  ;;  %v963_v52 = vmul.f32 %v955_v18, %v1612_v41 }
 0x5a7   :  { %v1214_v51 = vpop.eup %1213 }
 0x5a8   :  { %v962_v35 = vmul.f32 %v1214_v51, %v961_v26 }
 0x5aa   :  { %v964_v44 = vadd.f32 %v963_v52, %v962_v35 }
 0x5ac   :  { %966 = vst [vmem:[#allocation8 + $0x38] sm:$0xff] %v964_v44 }
 0x5ad   :  { %980 = dma.vmem_to_hbm [thread:$0]  %s973_s2, 1024, %s975_s4, [#allocation5], %s1302_s5, %s1302_s5, %s1303_s6  }
 0x5ae   :  { %1292 = dma.done.wait [#allocation5], 1024  }
 0x5af   :  { %1293 = vsyncadd [#allocation5], 4294966272 }
 0x5b0   :  { %985 = vsyncpa [#allocation4], 1 }
 0x5b1   :  { %986 = vsyncpa [#allocation7], 1 }
 0x5b2   :  { %987 = vsyncpa [#allocation5], 1 }

</bundles_post_ra>
